<compile_context>
chip_gen: v6e
topology: v6e:2x2x1
jax: 0.10.0
libtpu: 0.0.40
codegen_flags: <defaults>
</compile_context>

<pallas_src>
import math

import numpy as np
import jax
import jax.numpy as jnp
from jax.experimental import pallas as pl
from jax.experimental.pallas import tpu as pltpu


# --------------------------------- kernel ----------------------------------

def attn_module_kernel(x_ref, w_in_ref, b_in_ref, ones_ref,
                       w_syn_ref, b_syn_ref, rp_w_ref, rp_b_ref, out_ref):
    f32, bf16 = jnp.float32, jnp.bfloat16
    B, T, F = x_ref.shape
    BT = B * T
    E = w_in_ref.shape[1] // 6
    D = w_syn_ref.shape[1]
    out_width = out_ref.shape[-1]

    # Fused input projection: covers q1/k1/v1/q2/k2/v2 AND both attention
    # in-projections; q columns are pre-scaled by 1/sqrt(dh) wrapper-side.
    x2 = x_ref[...].reshape(BT, F).astype(bf16)
    hp = jnp.dot(x2, w_in_ref[...], preferred_element_type=f32) + b_in_ref[...]
    hp = hp.reshape(B, T, 6 * E)
    q = hp[:, :, 0:2 * E]            # [q_attn1 | q_attn2]  (scaled)
    k = hp[:, :, 2 * E:4 * E]        # [k_attn1 | k_attn2]
    v = hp[:, :, 4 * E:6 * E]        # [v_attn1 | v_attn2]

    # Head-split-free attention core (both attentions at once, E stays on lanes):
    # per-head scores = segment-sum over head lane segments of q_i * k_j, computed
    # with a single block-diagonal "ones" matmul (M = B*T*T rows).
    prod = (q[:, :, None, :] * k[:, None, :, :]).astype(bf16)        # (B,Ti,Tj,2E)
    sexp = jnp.dot(prod.reshape(BT * T, 2 * E), ones_ref[...],
                   preferred_element_type=f32).reshape(B, T, T, 2 * E)

    # softmax over the key axis (sublane reduction); approx reciprocal (EUP) is
    # fine here — it only feeds the attention average.
    m = jnp.max(sexp, axis=2, keepdims=True)
    e = jnp.exp(sexp - m)
    p = e * pl.reciprocal(jnp.sum(e, axis=2, keepdims=True), approx=True)

    # value contraction: VPU multiply + sublane reduce (no per-head matmuls).
    o = jnp.sum(p * v[:, None, :, :], axis=2)                         # (B, T, 2E)
    o1 = o[:, :, :E].reshape(BT, E)   # attn1 output, pre out-projection
    o2 = o[:, :, E:].reshape(BT, E)   # attn2 output, pre out-projection

    # synonym head: softmax(o2 @ (A2_out @ P3) + const); EXACT normalization for
    # the final output distribution.
    syn = jnp.dot(o2.astype(bf16), w_syn_ref[...],
                  preferred_element_type=f32) + b_syn_ref[...]
    sm = jnp.max(syn, axis=-1, keepdims=True)
    se = jnp.exp(syn - sm)
    synonym_probs = se / jnp.sum(se, axis=-1, keepdims=True)

    # replace head: sigmoid(o1·w0 + o2·w1 + c) — out-proj/proj1/proj2 all folded
    # into two (E,) vectors; VPU multiply + lane reduce instead of 1-lane matmuls.
    rp_w = rp_w_ref[...]
    rp_logit = (jnp.sum(o1 * rp_w[0:1, :], axis=-1, keepdims=True)
                + jnp.sum(o2 * rp_w[1:2, :], axis=-1, keepdims=True)
                + rp_b_ref[0])
    replace_probs = jax.nn.sigmoid(rp_logit)                          # (BT, 1)

    # lane-dense packed output: cols [0:D] = synonym probs, cols [D:] = replace prob
    pad = out_width - D
    slab = jnp.concatenate(
        [synonym_probs, jnp.broadcast_to(replace_probs, (BT, pad))], axis=-1)
    out_ref[...] = slab.reshape(B, T, out_width)


# ------------------------- wrapper-side weight packing ----------------------

def _ones_blockdiag(E, dh1, dh2):
    """(2E, 2E) block-diagonal ones: dh1-blocks on the first E, dh2 on the last E."""
    m = np.zeros((2 * E, 2 * E), np.float32)
    for h in range(E // dh1):
        m[h * dh1:(h + 1) * dh1, h * dh1:(h + 1) * dh1] = 1.0
    for h in range(E // dh2):
        m[E + h * dh2:E + (h + 1) * dh2, E + h * dh2:E + (h + 1) * dh2] = 1.0
    return jnp.asarray(m)


def pack_params(params, *, num_heads, embed_dim, dict_dim):
    """Compose all affine maps once (f32), cast matmul operands to bf16."""
    E, D = embed_dim, dict_dim
    H1, H2 = num_heads
    s1 = 1.0 / math.sqrt(E // H1)
    s2 = 1.0 / math.sqrt(E // H2)

    def comp(w_x, b_x, a_w, a_b, scale=1.0):
        # (x @ w_x + b_x) @ a_w + a_b  ==  x @ (w_x @ a_w) + (b_x @ a_w + a_b)
        return (w_x @ a_w) * scale, (b_x @ a_w + a_b) * scale

    q1w, q1b = comp(params["qkv1_w"][:, :E],        params["qkv1_b"][:, :E],
                    params["a1_in_w"][:, :E],       params["a1_in_b"][:, :E], s1)
    q2w, q2b = comp(params["qkv2_w"][:, :E],        params["qkv2_b"][:, :E],
                    params["a2_in_w"][:, :E],       params["a2_in_b"][:, :E], s2)
    k1w, k1b = comp(params["qkv1_w"][:, E:2 * E],   params["qkv1_b"][:, E:2 * E],
                    params["a1_in_w"][:, E:2 * E],  params["a1_in_b"][:, E:2 * E])
    k2w, k2b = comp(params["qkv2_w"][:, E:2 * E],   params["qkv2_b"][:, E:2 * E],
                    params["a2_in_w"][:, E:2 * E],  params["a2_in_b"][:, E:2 * E])
    v1w, v1b = comp(params["qkv1_w"][:, 2 * E:],    params["qkv1_b"][:, 2 * E:],
                    params["a1_in_w"][:, 2 * E:],   params["a1_in_b"][:, 2 * E:])
    v2w, v2b = comp(params["qkv2_w"][:, 2 * E:],    params["qkv2_b"][:, 2 * E:],
                    params["a2_in_w"][:, 2 * E:],   params["a2_in_b"][:, 2 * E:])

    w_in = jnp.concatenate([q1w, q2w, k1w, k2w, v1w, v2w], axis=1)    # (F, 6E)
    b_in = jnp.concatenate([q1b, q2b, k1b, k2b, v1b, v2b], axis=1)    # (1, 6E)

    ones2e = _ones_blockdiag(E, E // H1, E // H2)                      # (2E, 2E)

    w_syn = params["a2_out_w"] @ params["p3_w"]                        # (E, D)
    b_syn = params["a2_out_b"] @ params["p3_w"] + params["p3_b"]       # (1, D)

    rp1 = (params["a1_out_w"] @ params["p2_w"])[:, 0]                  # (E,)
    rp2 = (params["a2_out_w"] @ params["p1_w"] @ params["p2_w"])[:, 0]
    rp_w = jnp.stack([rp1, rp2], axis=0)                               # (2, E)
    rp_b = (params["a1_out_b"] @ params["p2_w"]
            + (params["a2_out_b"] @ params["p1_w"] + params["p1_b"]) @ params["p2_w"]
            + params["p2_b"]).reshape(1)                               # (1,)

    return {
        "w_in": w_in.astype(jnp.bfloat16), "b_in": b_in,
        "ones2e": ones2e.astype(jnp.bfloat16),
        "w_syn": w_syn.astype(jnp.bfloat16), "b_syn": b_syn,
        "rp_w": rp_w, "rp_b": rp_b,
    }


# -------------------------------- forward -----------------------------------

def attn_module_forward(x, packed):
    B, T, F = x.shape
    D = packed["w_syn"].shape[1]
    out_width = ((D + 1 + 127) // 128) * 128     # lane-dense slab (multiple of 128)

    vmem = pltpu.MemorySpace.VMEM
    smem = pltpu.MemorySpace.SMEM

    out = pl.pallas_call(
        attn_module_kernel,
        out_shape=jax.ShapeDtypeStruct((B, T, out_width), jnp.float32),
        in_specs=[pl.BlockSpec(memory_space=vmem)] * 7
                 + [pl.BlockSpec(memory_space=smem)],
        out_specs=pl.BlockSpec(memory_space=vmem),
    )(x, packed["w_in"], packed["b_in"], packed["ones2e"],
      packed["w_syn"], packed["b_syn"], packed["rp_w"], packed["rp_b"])

    replace_probs = out[..., D:D + 1]
    synonym_probs = out[..., :D]
    return replace_probs, synonym_probs


# ---------------------------- pure-JAX reference ----------------------------

def _ref_mha(q_in, k_in, v_in, in_w, in_b, out_w, out_b, num_heads):
    B, T, E = q_in.shape
    dh = E // num_heads
    q = q_in @ in_w[:, :E] + in_b[0, :E]
    k = k_in @ in_w[:, E:2 * E] + in_b[0, E:2 * E]
    v = v_in @ in_w[:, 2 * E:] + in_b[0, 2 * E:]
    q = q.reshape(B, T, num_heads, dh).transpose(0, 2, 1, 3) / math.sqrt(dh)
    k = k.reshape(B, T, num_heads, dh).transpose(0, 2, 1, 3)
    v = v.reshape(B, T, num_heads, dh).transpose(0, 2, 1, 3)
    s = jnp.einsum("bhtd,bhsd->bhts", q, k)
    p = jax.nn.softmax(s, axis=-1)
    o = jnp.einsum("bhts,bhsd->bhtd", p, v)
    o = o.transpose(0, 2, 1, 3).reshape(B, T, E)
    return o @ out_w + out_b[0]


def attn_module_reference(x, params, *, num_heads, embed_dim):
    E = embed_dim
    qkv1 = x @ params["qkv1_w"] + params["qkv1_b"][0]
    qkv2 = x @ params["qkv2_w"] + params["qkv2_b"][0]
    q1, k1, v1 = qkv1[..., :E], qkv1[..., E:2 * E], qkv1[..., 2 * E:]
    q2, k2, v2 = qkv2[..., :E], qkv2[..., E:2 * E], qkv2[..., 2 * E:]
    a1 = _ref_mha(q1, k1, v1, params["a1_in_w"], params["a1_in_b"],
                  params["a1_out_w"], params["a1_out_b"], num_heads[0])
    a2 = _ref_mha(q2, k2, v2, params["a2_in_w"], params["a2_in_b"],
                  params["a2_out_w"], params["a2_out_b"], num_heads[1])
    a2p1 = a2 @ params["p1_w"] + params["p1_b"][0]
    rp = jax.nn.sigmoid((a1 + a2p1) @ params["p2_w"] + params["p2_b"][0])
    sp = jax.nn.softmax(a2 @ params["p3_w"] + params["p3_b"][0], axis=-1)
    return rp, sp


# ----------------------------------- main ------------------------------------

def init_params(key, *, input_dim, embed_dim, dict_dim):
    """Deterministic synthetic init (normal std=0.02 weights, zero biases),
    matching the module's _xavier_initialization convention."""
    E, F, D = embed_dim, input_dim, dict_dim
    names_shapes = [
        ("qkv1_w", (F, 3 * E)), ("qkv1_b", (1, 3 * E)),
        ("qkv2_w", (F, 3 * E)), ("qkv2_b", (1, 3 * E)),
        ("a1_in_w", (E, 3 * E)), ("a1_in_b", (1, 3 * E)),
        ("a1_out_w", (E, E)), ("a1_out_b", (1, E)),
        ("a2_in_w", (E, 3 * E)), ("a2_in_b", (1, 3 * E)),
        ("a2_out_w", (E, E)), ("a2_out_b", (1, E)),
        ("p1_w", (E, E)), ("p1_b", (1, E)),
        ("p2_w", (E, 1)), ("p2_b", (1, 1)),
        ("p3_w", (E, D)), ("p3_b", (1, D)),
    ]
    params = {}
    for name, shape in names_shapes:
        key, sub = jax.random.split(key)
        if name.endswith("_b"):
            params[name] = jnp.zeros(shape, jnp.float32)
        else:
            params[name] = 0.02 * jax.random.normal(sub, shape, jnp.float32)
    return params


if __name__ == "__main__":
    # config: input_dim=16, embed_dim=32, num_heads=(2, 4), dropout=(0., 0.),
    #         dict_dim=64, replace_head='sigmoid', synonym_head='softmax'
    B, T, F = 2, 8, 16
    E, D = 32, 64
    num_heads = (2, 4)

    key = jax.random.PRNGKey(0)
    key, xk = jax.random.split(key)
    x = jax.random.normal(xk, (B, T, F), jnp.float32)
    params = init_params(key, input_dim=F, embed_dim=E, dict_dim=D)

    # Weight packing / folding done ONCE (params are static); forward is jitted.
    packed = jax.tree_util.tree_map(jax.block_until_ready,
                                    pack_params(params, num_heads=num_heads,
                                                embed_dim=E, dict_dim=D))
    forward = jax.jit(attn_module_forward)

    rp, sp = forward(x, packed)
    jax.block_until_ready((rp, sp))

    # sanity check against a pure-JAX f32 reference (bf16-matmul tolerance)
    rp_ref, sp_ref = attn_module_reference(x, params, num_heads=num_heads, embed_dim=E)
    assert rp.shape == (B, T, 1) and sp.shape == (B, T, D)
    assert jnp.allclose(rp, rp_ref, atol=2e-2, rtol=2e-2)
    assert jnp.allclose(sp, sp_ref, atol=2e-2, rtol=2e-2)

    print("KERNEL_OK")
</pallas_src>

<mosaic_0001>
module attributes {stable_mosaic.version = 11 : i64} {
  func.func @attn_module_kernel(%arg0: memref<2x8x16xf32, #tpu.memory_space<vmem>>, %arg1: memref<16x192xbf16, #tpu.memory_space<vmem>>, %arg2: memref<1x192xf32, #tpu.memory_space<vmem>>, %arg3: memref<64x64xbf16, #tpu.memory_space<vmem>>, %arg4: memref<32x64xbf16, #tpu.memory_space<vmem>>, %arg5: memref<1x64xf32, #tpu.memory_space<vmem>>, %arg6: memref<2x32xf32, #tpu.memory_space<vmem>>, %arg7: memref<1xf32, #tpu.memory_space<smem>>, %arg8: memref<2x8x128xf32, #tpu.memory_space<vmem>>) attributes {dimension_semantics = [], scalar_prefetch = 0 : i64, scratch_operands = 0 : i64, tpu.core_type = #tpu.core_type<tc>} {
    %c0 = arith.constant 0 : index
    %c0_0 = arith.constant 0 : index
    %c0_1 = arith.constant 0 : index
    %0 = vector.load %arg0[%c0, %c0_0, %c0_1] : memref<2x8x16xf32, #tpu.memory_space<vmem>>, vector<2x8x16xf32>
    %1 = vector.shape_cast %0 : vector<2x8x16xf32> to vector<16x16xf32>
    %2 = arith.truncf %1 : vector<16x16xf32> to vector<16x16xbf16>
    %c0_2 = arith.constant 0 : index
    %c0_3 = arith.constant 0 : index
    %3 = vector.load %arg1[%c0_2, %c0_3] : memref<16x192xbf16, #tpu.memory_space<vmem>>, vector<16x192xbf16>
    %cst = arith.constant dense<0.000000e+00> : vector<16x192xf32>
    %4 = tpu.matmul %2, %3, %cst {dimension_numbers = #tpu.dot_dimension_numbers<[1], [0], [0], [1], [0, 0, 1, 1], [], []>} : vector<16x16xbf16>, vector<16x192xbf16>, vector<16x192xf32> -> vector<16x192xf32>
    %c0_4 = arith.constant 0 : index
    %c0_5 = arith.constant 0 : index
    %5 = vector.load %arg2[%c0_4, %c0_5] : memref<1x192xf32, #tpu.memory_space<vmem>>, vector<1x192xf32>
    %6 = vector.broadcast %5 : vector<1x192xf32> to vector<16x192xf32>
    %7 = arith.addf %4, %6 : vector<16x192xf32>
    %8 = vector.shape_cast %7 : vector<16x192xf32> to vector<2x8x192xf32>
    %9 = vector.extract_strided_slice %8 {offsets = [0, 0, 0], sizes = [2, 8, 64], strides = [1, 1, 1]} : vector<2x8x192xf32> to vector<2x8x64xf32>
    %10 = vector.extract_strided_slice %8 {offsets = [0, 0, 64], sizes = [2, 8, 64], strides = [1, 1, 1]} : vector<2x8x192xf32> to vector<2x8x64xf32>
    %11 = vector.extract_strided_slice %8 {offsets = [0, 0, 128], sizes = [2, 8, 64], strides = [1, 1, 1]} : vector<2x8x192xf32> to vector<2x8x64xf32>
    %12 = vector.shape_cast %9 : vector<2x8x64xf32> to vector<2x8x1x64xf32>
    %13 = vector.shape_cast %10 : vector<2x8x64xf32> to vector<2x1x8x64xf32>
    %14 = vector.broadcast %12 : vector<2x8x1x64xf32> to vector<2x8x8x64xf32>
    %15 = vector.broadcast %13 : vector<2x1x8x64xf32> to vector<2x8x8x64xf32>
    %16 = arith.mulf %14, %15 : vector<2x8x8x64xf32>
    %17 = arith.truncf %16 : vector<2x8x8x64xf32> to vector<2x8x8x64xbf16>
    %18 = vector.shape_cast %17 : vector<2x8x8x64xbf16> to vector<128x64xbf16>
    %c0_6 = arith.constant 0 : index
    %c0_7 = arith.constant 0 : index
    %19 = vector.load %arg3[%c0_6, %c0_7] : memref<64x64xbf16, #tpu.memory_space<vmem>>, vector<64x64xbf16>
    %cst_8 = arith.constant dense<0.000000e+00> : vector<128x64xf32>
    %20 = tpu.matmul %18, %19, %cst_8 {dimension_numbers = #tpu.dot_dimension_numbers<[1], [0], [0], [1], [0, 0, 1, 1], [], []>} : vector<128x64xbf16>, vector<64x64xbf16>, vector<128x64xf32> -> vector<128x64xf32>
    %21 = vector.shape_cast %20 : vector<128x64xf32> to vector<2x8x8x64xf32>
    %cst_9 = arith.constant dense<0xFF800000> : vector<2x8x64xf32>
    %22 = vector.multi_reduction <maximumf>, %21, %cst_9 [2] : vector<2x8x8x64xf32> to vector<2x8x64xf32>
    %23 = vector.shape_cast %22 : vector<2x8x64xf32> to vector<2x8x1x64xf32>
    %24 = vector.broadcast %23 : vector<2x8x1x64xf32> to vector<2x8x8x64xf32>
    %25 = arith.subf %21, %24 : vector<2x8x8x64xf32>
    %26 = math.exp %25 : vector<2x8x8x64xf32>
    %cst_10 = arith.constant dense<0.000000e+00> : vector<2x8x64xf32>
    %27 = vector.multi_reduction <add>, %26, %cst_10 [2] : vector<2x8x8x64xf32> to vector<2x8x64xf32>
    %28 = vector.shape_cast %27 : vector<2x8x64xf32> to vector<2x8x1x64xf32>
    %29 = tpu.reciprocal %28 {approx = true} : vector<2x8x1x64xf32> -> vector<2x8x1x64xf32>
    %30 = vector.broadcast %29 : vector<2x8x1x64xf32> to vector<2x8x8x64xf32>
    %31 = arith.mulf %26, %30 : vector<2x8x8x64xf32>
    %32 = vector.shape_cast %11 : vector<2x8x64xf32> to vector<2x1x8x64xf32>
    %33 = vector.broadcast %32 : vector<2x1x8x64xf32> to vector<2x8x8x64xf32>
    %34 = arith.mulf %31, %33 : vector<2x8x8x64xf32>
    %cst_11 = arith.constant dense<0.000000e+00> : vector<2x8x64xf32>
    %35 = vector.multi_reduction <add>, %34, %cst_11 [2] : vector<2x8x8x64xf32> to vector<2x8x64xf32>
    %36 = vector.extract_strided_slice %35 {offsets = [0, 0, 0], sizes = [2, 8, 32], strides = [1, 1, 1]} : vector<2x8x64xf32> to vector<2x8x32xf32>
    %37 = vector.shape_cast %36 : vector<2x8x32xf32> to vector<16x32xf32>
    %38 = vector.extract_strided_slice %35 {offsets = [0, 0, 32], sizes = [2, 8, 32], strides = [1, 1, 1]} : vector<2x8x64xf32> to vector<2x8x32xf32>
    %39 = vector.shape_cast %38 : vector<2x8x32xf32> to vector<16x32xf32>
    %40 = arith.truncf %39 : vector<16x32xf32> to vector<16x32xbf16>
    %c0_12 = arith.constant 0 : index
    %c0_13 = arith.constant 0 : index
    %41 = vector.load %arg4[%c0_12, %c0_13] : memref<32x64xbf16, #tpu.memory_space<vmem>>, vector<32x64xbf16>
    %cst_14 = arith.constant dense<0.000000e+00> : vector<16x64xf32>
    %42 = tpu.matmul %40, %41, %cst_14 {dimension_numbers = #tpu.dot_dimension_numbers<[1], [0], [0], [1], [0, 0, 1, 1], [], []>} : vector<16x32xbf16>, vector<32x64xbf16>, vector<16x64xf32> -> vector<16x64xf32>
    %c0_15 = arith.constant 0 : index
    %c0_16 = arith.constant 0 : index
    %43 = vector.load %arg5[%c0_15, %c0_16] : memref<1x64xf32, #tpu.memory_space<vmem>>, vector<1x64xf32>
    %44 = vector.broadcast %43 : vector<1x64xf32> to vector<16x64xf32>
    %45 = arith.addf %42, %44 : vector<16x64xf32>
    %cst_17 = arith.constant dense<0xFF800000> : vector<16xf32>
    %46 = vector.multi_reduction <maximumf>, %45, %cst_17 [1] : vector<16x64xf32> to vector<16xf32>
    %47 = vector.shape_cast %46 : vector<16xf32> to vector<16x1xf32>
    %48 = vector.broadcast %47 : vector<16x1xf32> to vector<16x64xf32>
    %49 = arith.subf %45, %48 : vector<16x64xf32>
    %50 = math.exp %49 : vector<16x64xf32>
    %cst_18 = arith.constant dense<0.000000e+00> : vector<16xf32>
    %51 = vector.multi_reduction <add>, %50, %cst_18 [1] : vector<16x64xf32> to vector<16xf32>
    %52 = vector.shape_cast %51 : vector<16xf32> to vector<16x1xf32>
    %53 = vector.broadcast %52 : vector<16x1xf32> to vector<16x64xf32>
    %54 = arith.divf %50, %53 : vector<16x64xf32>
    %c0_19 = arith.constant 0 : index
    %c0_20 = arith.constant 0 : index
    %55 = vector.load %arg6[%c0_19, %c0_20] : memref<2x32xf32, #tpu.memory_space<vmem>>, vector<2x32xf32>
    %56 = vector.extract_strided_slice %55 {offsets = [0, 0], sizes = [1, 32], strides = [1, 1]} : vector<2x32xf32> to vector<1x32xf32>
    %57 = vector.broadcast %56 : vector<1x32xf32> to vector<16x32xf32>
    %58 = arith.mulf %37, %57 : vector<16x32xf32>
    %cst_21 = arith.constant dense<0.000000e+00> : vector<16xf32>
    %59 = vector.multi_reduction <add>, %58, %cst_21 [1] : vector<16x32xf32> to vector<16xf32>
    %60 = vector.shape_cast %59 : vector<16xf32> to vector<16x1xf32>
    %61 = vector.extract_strided_slice %55 {offsets = [1, 0], sizes = [1, 32], strides = [1, 1]} : vector<2x32xf32> to vector<1x32xf32>
    %62 = vector.broadcast %61 : vector<1x32xf32> to vector<16x32xf32>
    %63 = arith.mulf %39, %62 : vector<16x32xf32>
    %cst_22 = arith.constant dense<0.000000e+00> : vector<16xf32>
    %64 = vector.multi_reduction <add>, %63, %cst_22 [1] : vector<16x32xf32> to vector<16xf32>
    %65 = vector.shape_cast %64 : vector<16xf32> to vector<16x1xf32>
    %66 = arith.addf %60, %65 : vector<16x1xf32>
    %c0_23 = arith.constant 0 : index
    %67 = memref.load %arg7[%c0_23] : memref<1xf32, #tpu.memory_space<smem>>
    %68 = vector.broadcast %67 : f32 to vector<16x1xf32>
    %69 = arith.addf %66, %68 : vector<16x1xf32>
    %70 = arith.negf %69 : vector<16x1xf32>
    %71 = math.exp %70 : vector<16x1xf32>
    %cst_24 = arith.constant 1.000000e+00 : f32
    %72 = vector.broadcast %cst_24 : f32 to vector<16x1xf32>
    %73 = arith.addf %72, %71 : vector<16x1xf32>
    %74 = arith.divf %72, %73 : vector<16x1xf32>
    %75 = vector.shape_cast %74 : vector<16x1xf32> to vector<16x1xf32>
    %76 = vector.broadcast %75 : vector<16x1xf32> to vector<16x64xf32>
    %77 = tpu.concatenate %54, %76 in 1 : vector<16x64xf32>, vector<16x64xf32> -> vector<16x128xf32>
    %78 = vector.shape_cast %77 : vector<16x128xf32> to vector<2x8x128xf32>
    %c0_25 = arith.constant 0 : index
    %c0_26 = arith.constant 0 : index
    %c0_27 = arith.constant 0 : index
    %79 = vector.load %arg8[%c0_25, %c0_26, %c0_27] : memref<2x8x128xf32, #tpu.memory_space<vmem>>, vector<2x8x128xf32>
    tpu.vector_store %arg8[%c0_25, %c0_26, %c0_27], %78 {strides = array<i32>} : memref<2x8x128xf32, #tpu.memory_space<vmem>>, vector<2x8x128xf32>,
    return
  }
}

</mosaic_0001>

<bundles_post_ra>
// kernel: attn_module_forward.1
= control target key start
LH: loop header
LB: loop body
LE: loop exit
PB: predicated region body
PF: predicated region fallthrough
CT: control target
= control target key end

     0   :  { %14 = vsyncpa [#allocation4], 0  ;;  %s2123_s0 = inlined_call_operand.hbm [shape: f32[2,8,16], index: 0, kind: input, shape index: {}]   ;;  %s2124_s1 = inlined_call_operand.hbm [shape: bf16[16,192], index: 1, kind: input, shape index: {}]   ;;  %s2125_s2 = inlined_call_operand.vmem [shape: f32[1,192], index: 2, kind: input, shape index: {}]   ;;  %s2126_s3 = inlined_call_operand.hbm [shape: bf16[64,64], index: 3, kind: input, shape index: {}]   ;;  %s2127_s4 = inlined_call_operand.hbm [shape: bf16[32,64], index: 4, kind: input, shape index: {}]   ;;  %s2128_s5 = inlined_call_operand.vmem [shape: f32[1,64], index: 5, kind: input, shape index: {}]   ;;  %s2129_s6 = inlined_call_operand.vmem [shape: f32[2,32], index: 6, kind: input, shape index: {}]   ;;  %s2130_s7 = inlined_call_operand.<no memory space> [shape: f32[1], index: 7, kind: input, shape index: {}]   ;;  %s2131_s8 = inlined_call_operand.vmem [shape: f32[2,8,128], index: 8, kind: output, shape index: {}]  }
   0x1   :  { %15 = vsyncpa [#allocation6], 0 }
   0x2   :  { %16 = vsyncpa [#allocation9], 0  ;;  %s1629_s27 = smov [#allocation5]   ;;  %s1630_s29 = smov [#allocation3]  }
   0x3   :  { %s34_s28 = sshll.u32 %s1629_s27, 4  ;;  %s22_s30 = sshll.u32 %s1630_s29, 4  ;;  %s35_s28 = int_to_ptr.vmem [resolvable:$true] %s34_s28  ;;  %s23_s30 = int_to_ptr.vmem [resolvable:$true] %s22_s30 }
   0x4   :  { %s1551_s9 = scalar_lea.vmem %s35_s28, 256  ;;  %p1556_p1 = scmp.lt.s32.totalorder %s35_s28, %s35_s28 }
   0x5   :  { %p1552_p0 = scmp.ne.s32.totalorder %s35_s28, %s1551_s9  ;;  %p1557_p2 = scmp.lt.s32.totalorder %s1551_s9, %s1551_s9 }
   0x7   :  { %p1558_p3 = por %p1557_p2, %p1556_p1 }
   0x9   :  { %p1559_p4 = pnand %p1558_p3, %p1552_p0 }
   0xb   :  { %1562 = shalt.err (!%p1559_p4)
}
   0xc   :  { %s1631_s10 = smov 128   ;;  %s1632_s11 = smov 8  }
   0xd   :  { %40 = dma.hbm_to_vmem [thread:$0]  %s2124_s1, 256, %s35_s28, [#allocation6], %s1631_s10, %s1631_s10, %s1632_s11  }
   0xe   :  { %s1571_s14 = scalar_lea.vmem %s23_s30, 256  ;;  %p1576_p6 = scmp.lt.s32.totalorder %s23_s30, %s23_s30 }
   0xf   :  { %p1572_p5 = scmp.ne.s32.totalorder %s23_s30, %s1571_s14  ;;  %p1577_p7 = scmp.lt.s32.totalorder %s1571_s14, %s1571_s14 }
  0x11   :  { %p1578_p8 = por %p1577_p7, %p1576_p6 }
  0x13   :  { %p1579_p9 = pnand %p1578_p8, %p1572_p5 }
  0x15   :  { %1582 = shalt.err (!%p1579_p9)
}
  0x16   :  { %28 = dma.hbm_to_vmem [thread:$0]  %s2123_s0, 256, %s23_s30, [#allocation4], %s1631_s10, %s1631_s10, %s1632_s11  }
  0x17   :  { %s1633_s17 = smov [#allocation7]  }
  0x18   :  { %s48_s18 = sshll.u32 %s1633_s17, 4  ;;  %s49_s18 = int_to_ptr.vmem [resolvable:$true] %s48_s18 }
  0x19   :  { %s1591_s19 = scalar_lea.vmem %s49_s18, 512  ;;  %p1596_p11 = scmp.lt.s32.totalorder %s49_s18, %s49_s18 }
  0x1a   :  { %p1592_p10 = scmp.ne.s32.totalorder %s49_s18, %s1591_s19  ;;  %p1597_p12 = scmp.lt.s32.totalorder %s1591_s19, %s1591_s19 }
  0x1c   :  { %p1598_p13 = por %p1597_p12, %p1596_p11 }
  0x1e   :  { %p1599_p0 = pnand %p1598_p13, %p1592_p10 }
  0x20   :  { %1602 = shalt.err (!%p1599_p0)
}
  0x21   :  { %s1634_s1 = smov 64   ;;  %s1635_s20 = smov 4  }
  0x22   :  { %54 = dma.hbm_to_vmem [thread:$0]  %s2126_s3, 512, %s49_s18, [#allocation6], %s1634_s1, %s1634_s1, %s1635_s20  }
  0x23   :  { %s1636_s23 = smov [#allocation8]  }
  0x24   :  { %s60_s0 = sshll.u32 %s1636_s23, 4  ;;  %s61_s0 = int_to_ptr.vmem [resolvable:$true] %s60_s0 }
  0x25   :  { %s1611_s24 = scalar_lea.vmem %s61_s0, 256  ;;  %p1616_p2 = scmp.lt.s32.totalorder %s61_s0, %s61_s0 }
  0x26   :  { %p1612_p1 = scmp.ne.s32.totalorder %s61_s0, %s1611_s24  ;;  %p1617_p3 = scmp.lt.s32.totalorder %s1611_s24, %s1611_s24 }
  0x28   :  { %p1618_p4 = por %p1617_p3, %p1616_p2 }
  0x2a   :  { %p1619_p5 = pnand %p1618_p4, %p1612_p1 }
  0x2c   :  { %1622 = shalt.err (!%p1619_p5)
}
  0x2d   :  { %66 = dma.hbm_to_vmem [thread:$0]  %s2127_s4, 256, %s61_s0, [#allocation9], %s1634_s1, %s1634_s1, %s1635_s20  }
  0x2e   :  { %1623 = dma.done.wait [#allocation4], 256  }
  0x2f   :  { %1624 = vsyncadd [#allocation4], 4294967040 }
  0x30   :  { %1625 = dma.done.wait [#allocation6], 768  }
  0x31   :  { %1626 = vsyncadd [#allocation6], 4294966528 }
  0x32   :  { %1627 = dma.done.wait [#allocation9], 256  }
  0x33   :  { %1628 = vsyncadd [#allocation9], 4294967040  ;;  %v1637_v0 = vmov 0   ;;  %v1454_v1 = vld [vmem:[#allocation5 + $0x4] ss:$8 sps:$4 sm:$0xff]   ;;  %v86_v3 = vld [vmem:[#allocation3] sm:$0xff]  ;;  %v93_v9 = vlaneseq }
  0x34   :  { %149 = vmatprep.mubr.bf16.mxu0 %v1637_v0  ;;  %v1456_v2 = vld [vmem:[#allocation5] ss:$8 sps:$4 sm:$0xff]   ;;  %v87_v4 = vld [vmem:[#allocation3 + $0x8] sm:$0xff]  ;;  %131 = vmatprep.subr.bf16.mxu0 %v1454_v1  ;;  %vm113_vm0 = vcmask 130048   ;;  %v1460_v11 = vld [vmem:[#allocation7] sm:$0xff]   ;;  %vm450_vm1 = vcmask 523264  }
  0x35   :  { %v88_v5 = vpack.c.bf16 %v87_v4, %v86_v3  ;;  %132 = vmatpush1.bf16.msra.mxu0 %v1456_v2  ;;  %v1457_v6 = vld [vmem:[#allocation7 + $0x18] sm:$0xff]   ;;  %v1458_v7 = vld [vmem:[#allocation7 + $0x10] sm:$0xff]   ;;  %v1459_v8 = vld [vmem:[#allocation7 + $0x8] sm:$0xff]   ;;  %v1704_v10 = vshrl.u32 %v93_v9, 7  ;;  %v1638_v20 = vmov 1966171168  }
  0x36   :  { %1400 = vmatprep.subr.bf16.mxu0 %v1457_v6  ;;  %1432 = vmatprep.subr.bf16.mxu1 %v1457_v6  ;;  %v1712_v13 = vld [vmem:[%s2125_s2] sm:$0x3]  ;;  %v164_v21 = vunpack.c.l.s4 %v1638_v20  ;;  %vm1640_vm2 = vmmov 0   ;;  %vm1063_vm3 = vcmask 1041409   ;;  %vm1065_vm4 = vcmask 1042434   ;;  %s1641_s28 = smov 96  }
  0x37   :  { %1436 = vmatpush3.bf16.msra.mxu1 %v1457_v6  ;;  %v1707_v12 = vsub.s32 0, %v1704_v10  ;;  %vm1067_vm5 = vcmask 1043459   ;;  %vm1069_vm6 = vcmask 1044484   ;;  %vm1071_vm7 = vcmask 1045509   ;;  %s1642_s29 = smov 32  }
  0x38   :  { %1350 = vmatmul.mubr.msk.bf16.vlgmr.msra.gmra.mxu0 %vm113_vm0, %v88_v5  ;;  %1433 = vmatprep.subr.bf16.mxu1 %v1458_v7  ;;  %v165_v22 = vunpack.c.0.s8 %v164_v21  ;;  %vm1073_vm8 = vcmask 1046534   ;;  %vm1075_vm9 = vcmask 1047559   ;;  %vm1099_vm10 = vcmask 261120  }
  0x39   :  { %1401 = vmatpush3.bf16.msra.mxu0 %v1457_v6  ;;  %v96_v14 = vrot.slane %v1712_v13, %v1707_v12 }
  0x3a   :  { %1402 = vmatprep.subr.bf16.mxu0 %v1458_v7  ;;  %v168_v23 = vsub.s32 %v165_v22, %v1704_v10 }
  0x3b   :  { %1437 = vmatpush3.bf16.msra.mxu1 %v1458_v7 }
  0x3c   :  { %1434 = vmatprep.subr.bf16.mxu1 %v1459_v8 }
  0x3d   :  { %1403 = vmatpush3.bf16.msra.mxu0 %v1458_v7 }
  0x3e   :  { %1404 = vmatprep.subr.bf16.mxu0 %v1459_v8 }
  0x3f   :  { %1438 = vmatpush3.bf16.msra.mxu1 %v1459_v8 }
  0x40   :  { %1435 = vmatprep.subr.bf16.mxu1 %v1460_v11 }
  0x41   :  { %1405 = vmatpush3.bf16.msra.mxu0 %v1459_v8 }
  0x42   :  { %1406 = vmatprep.subr.bf16.mxu0 %v1460_v11 }
  0x43   :  { %1439 = vmatpush3.bf16.msra.mxu1 %v1460_v11 }
  0x45   :  { %1407 = vmatpush3.bf16.msra.mxu0 %v1460_v11 }
  0xf8   :  { %v151_v15 = vpop.f32.mrf.mxu0 }
  0xf9   :  { %v152_v16 = vadd.f32 %v151_v15, %v96_v14 }
  0xfa   :  { %v1716_v17 = vpop.f32.mrf.mxu0 }
  0xfb   :  { %340 = vrot.lane.b32.xlu0 %v152_v16, %s1634_s1  ;;  %v162_v24 = vcombine.high %v152_v16, %v152_v16  ;;  %v169_v25 = vrot.slane %v152_v16, %v168_v23 }
  0xfc   :  { %v155_v18 = vpop.f32.mrf.mxu0 }
  0xfd   :  { %v156_v19 = vadd.f32 %v155_v18, %v96_v14  ;;  %v176_v26 = vrot.slane %v162_v24, %v168_v23  ;;  %v177_v27 = vcombine.high %v169_v25, %v169_v25  ;;  %v185_v30 = vrot.slane %v169_v25, %v168_v23 }
  0xff   :  { %342 = vrot.lane.b32.xlu0 %v156_v19, %s1634_s1  ;;  %v178_v28 = vcombine.high %v176_v26, %v176_v26  ;;  %v218_v29 = vrot.slane %v156_v19, %v168_v23  ;;  %v199_v31 = vrot.slane %v177_v27, %v168_v23  ;;  %v211_v32 = vcombine.high %v156_v19, %v156_v19 }
 0x100   :  { %v192_v34 = vrot.slane %v176_v26, %v168_v23  ;;  %v207_v36 = vcombine.high %v185_v30, %v185_v30  ;;  %v263_v43 = vrot.slane %v185_v30, %v1707_v12 }
 0x101   :  { %v226_v33 = vcombine.high %v218_v29, %v218_v29  ;;  %v206_v35 = vrot.slane %v178_v28, %v168_v23  ;;  %v209_v37 = vcombine.high %v199_v31, %v199_v31  ;;  %v225_v38 = vrot.slane %v211_v32, %v168_v23  ;;  %v1745_v32 = vpop.f32.mrf.mxu0 }
 0x102   :  { %v234_v39 = vrot.slane %v218_v29, %v168_v23  ;;  %v208_v41 = vcombine.high %v192_v34, %v192_v34  ;;  %v267_v44 = vrot.slane %v199_v31, %v1707_v12  ;;  %v271_v45 = vrot.slane %v207_v36, %v1707_v12 }
 0x103   :  { %v248_v40 = vrot.slane %v226_v33, %v168_v23  ;;  %v210_v42 = vcombine.high %v206_v35, %v206_v35  ;;  %v275_v46 = vrot.slane %v209_v37, %v1707_v12  ;;  %v279_v47 = vrot.slane %v192_v34, %v1707_v12 }
 0x104   :  { %v227_v48 = vcombine.high %v225_v38, %v225_v38  ;;  %v241_v49 = vrot.slane %v225_v38, %v168_v23  ;;  %v256_v50 = vcombine.high %v234_v39, %v234_v39  ;;  %v283_v51 = vrot.slane %v206_v35, %v1707_v12 }
 0x105   :  { %v258_v52 = vcombine.high %v248_v40, %v248_v40  ;;  %v295_v53 = vrot.slane %v234_v39, %v1707_v12  ;;  %v287_v55 = vrot.slane %v208_v41, %v1707_v12  ;;  %v291_v56 = vrot.slane %v210_v42, %v1707_v12 }
 0x106   :  { %v255_v1 = vrot.slane %v227_v48, %v168_v23  ;;  %v299_v2 = vrot.slane %v248_v40, %v1707_v12  ;;  %v303_v11 = vrot.slane %v256_v50, %v1707_v12  ;;  %v311_v15 = vrot.slane %v241_v49, %v1707_v12 }
 0x107   :  { %v307_v14 = vrot.slane %v258_v52, %v1707_v12  ;;  %v257_v23 = vcombine.high %v241_v49, %v241_v49 }
 0x108   :  { %v315_v18 = vrot.slane %v255_v1, %v1707_v12  ;;  %v259_v24 = vcombine.high %v255_v1, %v255_v1 }
 0x109   :  { %v319_v27 = vrot.slane %v257_v23, %v1707_v12 }
 0x10a   :  { %v323_v28 = vrot.slane %v259_v24, %v1707_v12 }
 0x16d   :  { %v341_v54 = vpop.permute.xlu0 %340 }
 0x16e   :  { %v346_v57 = vmul.f32 %v341_v54, %v263_v43  ;;  %v347_v58 = vmul.f32 %v341_v54, %v267_v44  ;;  %v350_v59 = vmul.f32 %v341_v54, %v279_v47  ;;  %v351_v60 = vmul.f32 %v341_v54, %v283_v51 }
 0x16f   :  { %v348_v61 = vmul.f32 %v341_v54, %v271_v45  ;;  %v349_v62 = vmul.f32 %v341_v54, %v275_v46  ;;  %v352_v63 = vmul.f32 %v341_v54, %v287_v55  ;;  %v353_v0 = vmul.f32 %v341_v54, %v291_v56 }
 0x170   :  { %v1377_v3 = vpack.c.bf16 %v347_v58, %v346_v57  ;;  %v1379_v4 = vpack.c.bf16 %v351_v60, %v350_v59 }
 0x171   :  { %v343_v5 = vpop.permute.xlu0 %342  ;;  %v1378_v6 = vpack.c.bf16 %v349_v62, %v348_v61  ;;  %v1380_v7 = vpack.c.bf16 %v353_v0, %v352_v63 }
 0x172   :  { %1408 = vmatprep.mubr.msk.bf16.mxu0 %vm450_vm1, %v1377_v3  ;;  %1412 = vmatprep.mubr.msk.bf16.mxu1 %vm450_vm1, %v1379_v4  ;;  %v354_v8 = vmul.f32 %v343_v5, %v295_v53  ;;  %v355_v9 = vmul.f32 %v343_v5, %v299_v2  ;;  %v356_v19 = vmul.f32 %v343_v5, %v303_v11 }
 0x173   :  { %1409 = vmatmul.mubr.msk.bf16.vlgmr.msra.gmra.mxu0 %vm450_vm1, %v1378_v6  ;;  %1413 = vmatmul.mubr.msk.bf16.vlgmr.msra.gmra.mxu1 %vm450_vm1, %v1380_v7  ;;  %v357_v20 = vmul.f32 %v343_v5, %v307_v14  ;;  %v358_v21 = vmul.f32 %v343_v5, %v311_v15  ;;  %v359_v22 = vmul.f32 %v343_v5, %v315_v18 }
 0x174   :  { %v1381_v16 = vpack.c.bf16 %v355_v9, %v354_v8  ;;  %v360_v29 = vmul.f32 %v343_v5, %v319_v27  ;;  %v361_v30 = vmul.f32 %v343_v5, %v323_v28 }
 0x175   :  { %v1382_v25 = vpack.c.bf16 %v357_v20, %v356_v19  ;;  %v1383_v26 = vpack.c.bf16 %v359_v22, %v358_v21 }
 0x176   :  { %1416 = vmatprep.mubr.msk.bf16.mxu1 %vm450_vm1, %v1381_v16  ;;  %v1384_v31 = vpack.c.bf16 %v361_v30, %v360_v29 }
 0x17b   :  { %1417 = vmatmul.mubr.msk.bf16.gmra.mxu1 %vm450_vm1, %v1382_v25 }
 0x17c   :  { %1420 = vmatprep.mubr.msk.bf16.mxu1 %vm450_vm1, %v1383_v26 }
 0x183   :  { %1421 = vmatmul.mubr.msk.bf16.gmra.mxu1 %vm450_vm1, %v1384_v31 }
 0x233   :  { %v1410_v33 = vpop.f32.mrf.mxu0  ;;  %v1747_v34 = vpop.f32.mrf.mxu1 }
 0x234   :  { %v586_v35 = vsel %vm450_vm1, %v1410_v33, -inf  ;;  %v614_v36 = vsel %vm450_vm1, %v1747_v34, -inf }
 0x235   :  { %v587_v37 = vrot.slane %v586_v35, 4  ;;  %v615_v38 = vrot.slane %v614_v36, 4  ;;  %v509_v39 = vpop.f32.mrf.mxu0  ;;  %v1752_v40 = vpop.f32.mrf.mxu1 }
 0x236   :  { %v572_v41 = vsel %vm450_vm1, %v509_v39, -inf  ;;  %v600_v42 = vsel %vm450_vm1, %v1752_v40, -inf }
 0x237   :  { %v588_v43 = vmax.f32 %v586_v35, %v587_v37  ;;  %v616_v44 = vmax.f32 %v614_v36, %v615_v38  ;;  %v573_v45 = vrot.slane %v572_v41, 4  ;;  %v601_v46 = vrot.slane %v600_v42, 4  ;;  %v1757_v47 = vpop.f32.mrf.mxu0  ;;  %v1759_v48 = vpop.f32.mrf.mxu1 }
 0x238   :  { %v593_v49 = vsel %vm450_vm1, %v1757_v47, -inf  ;;  %v621_v50 = vsel %vm450_vm1, %v1759_v48, -inf }
 0x239   :  { %v589_v51 = vrot.slane %v588_v43, 2  ;;  %v617_v52 = vrot.slane %v616_v44, 2  ;;  %v574_v53 = vmax.f32 %v572_v41, %v573_v45  ;;  %v602_v54 = vmax.f32 %v600_v42, %v601_v46  ;;  %v1765_v55 = vpop.f32.mrf.mxu0  ;;  %v1767_v56 = vpop.f32.mrf.mxu1 }
 0x23a   :  { %v594_v57 = vrot.slane %v593_v49, 4  ;;  %v622_v58 = vrot.slane %v621_v50, 4  ;;  %v579_v59 = vsel %vm450_vm1, %v1765_v55, -inf  ;;  %v607_v60 = vsel %vm450_vm1, %v1767_v56, -inf }
 0x23b   :  { %v590_v61 = vmax.f32 %v588_v43, %v589_v51  ;;  %v618_v62 = vmax.f32 %v616_v44, %v617_v52  ;;  %v575_v63 = vrot.slane %v574_v53, 2  ;;  %v603_v0 = vrot.slane %v602_v54, 2  ;;  %v1773_v5 = vpop.f32.mrf.mxu1 }
 0x23c   :  { %v595_v1 = vmax.f32 %v593_v49, %v594_v57  ;;  %v623_v2 = vmax.f32 %v621_v50, %v622_v58  ;;  %v580_v3 = vrot.slane %v579_v59, 4  ;;  %v608_v4 = vrot.slane %v607_v60, 4 }
 0x23d   :  { %v591_v6 = vrot.slane %v590_v61, 1  ;;  %v576_v7 = vmax.f32 %v574_v53, %v575_v63  ;;  %v604_v8 = vmax.f32 %v602_v54, %v603_v0  ;;  %v619_v18 = vrot.slane %v618_v62, 1  ;;  %v1775_v25 = vpop.f32.mrf.mxu1 }
 0x23e   :  { %v596_v9 = vrot.slane %v595_v1, 2  ;;  %v624_v11 = vrot.slane %v623_v2, 2  ;;  %v581_v14 = vmax.f32 %v579_v59, %v580_v3  ;;  %v609_v15 = vmax.f32 %v607_v60, %v608_v4 }
 0x23f   :  { %v592_v16 = vmax.f32 %v590_v61, %v591_v6  ;;  %v577_v19 = vrot.slane %v576_v7, 1  ;;  %v605_v20 = vrot.slane %v604_v8, 1  ;;  %v620_v35 = vmax.f32 %v618_v62, %v619_v18  ;;  %v1777_v44 = vpop.f32.mrf.mxu1 }
 0x240   :  { %v597_v21 = vmax.f32 %v595_v1, %v596_v9  ;;  %v625_v22 = vmax.f32 %v623_v2, %v624_v11  ;;  %v582_v23 = vrot.slane %v581_v14, 2  ;;  %v610_v24 = vrot.slane %v609_v15, 2 }
 0x241   :  { %v686_v26 = vsub.f32 %v1410_v33, %v592_v16  ;;  %v578_v27 = vmax.f32 %v576_v7, %v577_v19  ;;  %v606_v28 = vmax.f32 %v604_v8, %v605_v20  ;;  %v642_v45 = vsel %vm450_vm1, %v1773_v5, -inf  ;;  %v1787_v58 = vpop.f32.mrf.mxu1 }
 0x242   :  { %v598_v29 = vrot.slane %v597_v21, 1  ;;  %v583_v30 = vmax.f32 %v581_v14, %v582_v23  ;;  %v611_v31 = vmax.f32 %v609_v15, %v610_v24  ;;  %v626_v37 = vrot.slane %v625_v22, 1 }
 0x243   :  { %v684_v36 = vsub.f32 %v509_v39, %v578_v27  ;;  %v704_v38 = vmul.f32 1.442695, %v686_v26  ;;  %v688_v33 = vsub.f32 %v1752_v40, %v606_v28  ;;  %v690_v51 = vsub.f32 %v1747_v34, %v620_v35  ;;  %v1794_v7 = vpop.f32.mrf.mxu1 }
 0x244   :  { %v599_v41 = vmax.f32 %v597_v21, %v598_v29  ;;  %v584_v42 = vrot.slane %v583_v30, 1  ;;  %v612_v43 = vrot.slane %v611_v31, 1  ;;  %v643_v52 = vrot.slane %v642_v45, 4 }
 0x245   :  { %v700_v46 = vmul.f32 1.442695, %v684_v36  ;;  %v628_v39 = vsel %vm450_vm1, %v1775_v25, -inf  ;;  %1463 = vpow2.f32 %v704_v38  ;;  %v627_v53 = vmax.f32 %v625_v22, %v626_v37  ;;  %v1800_v26 = vpop.f32.mrf.mxu1 }
 0x246   :  { %v687_v49 = vsub.f32 %v1757_v47, %v599_v41  ;;  %v585_v50 = vmax.f32 %v583_v30, %v584_v42  ;;  %v613_v57 = vmax.f32 %v611_v31, %v612_v43  ;;  %v644_v60 = vmax.f32 %v642_v45, %v643_v52 }
 0x247   :  { %v629_v61 = vrot.slane %v628_v39, 4  ;;  %v649_v40 = vsel %vm450_vm1, %v1777_v44, -inf  ;;  %1465 = vpow2.f32 %v700_v46  ;;  %v708_v47 = vmul.f32 1.442695, %v688_v33  ;;  %v1808_v36 = vpop.f32.mrf.mxu1 }
 0x248   :  { %v685_v54 = vsub.f32 %v1765_v55, %v585_v50  ;;  %v706_v59 = vmul.f32 1.442695, %v687_v49  ;;  %v650_v62 = vrot.slane %v649_v40, 4  ;;  %v645_v63 = vrot.slane %v644_v60, 2 }
 0x249   :  { %v630_v0 = vmax.f32 %v628_v39, %v629_v61  ;;  %v635_v1 = vsel %vm450_vm1, %v1787_v58, -inf  ;;  %v712_v2 = vmul.f32 1.442695, %v690_v51  ;;  %v689_v3 = vsub.f32 %v1767_v56, %v613_v57  ;;  %v1825_v39 = vpop.f32.mrf.mxu1 }
 0x24a   :  { %v702_v34 = vmul.f32 1.442695, %v685_v54  ;;  %v651_v55 = vmax.f32 %v649_v40, %v650_v62  ;;  %v646_v4 = vmax.f32 %v644_v60, %v645_v63  ;;  %v691_v8 = vsub.f32 %v1759_v48, %v627_v53 }
 0x24b   :  { %v631_v6 = vrot.slane %v630_v0, 2  ;;  %v636_v9 = vrot.slane %v635_v1, 4  ;;  %v670_v16 = vsel %vm450_vm1, %v1794_v7, -inf  ;;  %v710_v18 = vmul.f32 1.442695, %v689_v3 }
 0x24c   :  { %1467 = vpow2.f32 %v702_v34  ;;  %v647_v11 = vrot.slane %v646_v4, 1  ;;  %v652_v15 = vrot.slane %v651_v55, 2  ;;  %v714_v20 = vmul.f32 1.442695, %v691_v8 }
 0x24d   :  { %1469 = vpow2.f32 %v706_v59  ;;  %v632_v14 = vmax.f32 %v630_v0, %v631_v6  ;;  %v637_v21 = vmax.f32 %v635_v1, %v636_v9  ;;  %v671_v22 = vrot.slane %v670_v16, 4 }
 0x24e   :  { %1471 = vpow2.f32 %v708_v47  ;;  %v648_v19 = vmax.f32 %v646_v4, %v647_v11  ;;  %v653_v24 = vmax.f32 %v651_v55, %v652_v15  ;;  %v656_v43 = vsel %vm450_vm1, %v1800_v26, -inf }
 0x24f   :  { %1473 = vpow2.f32 %v712_v2  ;;  %v633_v23 = vrot.slane %v632_v14, 1  ;;  %v638_v28 = vrot.slane %v637_v21, 2  ;;  %v672_v30 = vmax.f32 %v670_v16, %v671_v22 }
 0x250   :  { %v694_v56 = vsub.f32 %v1773_v5, %v648_v19  ;;  %1475 = vpow2.f32 %v710_v18  ;;  %v654_v5 = vrot.slane %v653_v24, 1  ;;  %v677_v50 = vsel %vm450_vm1, %v1808_v36, -inf }
 0x251   :  { %1477 = vpow2.f32 %v714_v20  ;;  %v634_v35 = vmax.f32 %v632_v14, %v633_v23  ;;  %v639_v42 = vmax.f32 %v637_v21, %v638_v28  ;;  %v673_v49 = vrot.slane %v672_v30, 2 }
 0x252   :  { %v1802_v48 = vpop.eup %1463  ;;  %v720_v27 = vmul.f32 1.442695, %v694_v56  ;;  %v655_v52 = vmax.f32 %v653_v24, %v654_v5  ;;  %v657_v59 = vrot.slane %v656_v43, 4  ;;  %v678_v47 = vrot.slane %v677_v50, 4 }
 0x253   :  { %v746_v31 = vsel %vm450_vm1, %v1802_v48, 0.0  ;;  %v692_v51 = vsub.f32 %v1775_v25, %v634_v35  ;;  %v640_v40 = vrot.slane %v639_v42, 1  ;;  %v674_v62 = vmax.f32 %v672_v30, %v673_v49 }
 0x254   :  { %v1804_v29 = vpop.eup %1465  ;;  %1479 = vpow2.f32 %v720_v27  ;;  %v747_v46 = vrot.slane %v746_v31, 4  ;;  %v663_v25 = vsel %vm450_vm1, %v1825_v39, -inf  ;;  %v695_v2 = vsub.f32 %v1777_v44, %v655_v52 }
 0x255   :  { %v732_v41 = vsel %vm450_vm1, %v1804_v29, 0.0  ;;  %v716_v1 = vmul.f32 1.442695, %v692_v51  ;;  %v641_v8 = vmax.f32 %v639_v42, %v640_v40  ;;  %v658_v9 = vmax.f32 %v656_v43, %v657_v59 }
 0x256   :  { %v733_v54 = vrot.slane %v732_v41, 4  ;;  %v748_v34 = vadd.f32 %v747_v46, %v746_v31  ;;  %v679_v11 = vmax.f32 %v677_v50, %v678_v47  ;;  %v675_v18 = vrot.slane %v674_v62, 1 }
 0x257   :  { %v664_v19 = vrot.slane %v663_v25, 4  ;;  %1481 = vpow2.f32 %v716_v1  ;;  %v722_v56 = vmul.f32 1.442695, %v695_v2  ;;  %v693_v44 = vsub.f32 %v1787_v58, %v641_v8 }
 0x258   :  { %v734_v55 = vadd.f32 %v733_v54, %v732_v41  ;;  %v749_v15 = vrot.slane %v748_v34, 2  ;;  %v676_v27 = vmax.f32 %v674_v62, %v675_v18  ;;  %v659_v42 = vrot.slane %v658_v9, 2  ;;  %v1461_v54 = vld [vmem:[#allocation8 + $0x8] sm:$0xff]  }
 0x259   :  { %v1810_v37 = vpop.eup %1467  ;;  %v718_v35 = vmul.f32 1.442695, %v693_v44  ;;  %v680_v43 = vrot.slane %v679_v11, 2  ;;  %1483 = vpow2.f32 %v722_v56  ;;  %v1639_v62 = vmov 0.0  }
 0x25a   :  { %v1812_v38 = vpop.eup %1469  ;;  %v739_v33 = vsel %vm450_vm1, %v1810_v37, 0.0  ;;  %v735_v22 = vrot.slane %v734_v55, 2  ;;  %v750_v5 = vadd.f32 %v749_v15, %v748_v34  ;;  %v698_v41 = vsub.f32 %v1794_v7, %v676_v27  ;;  %1424 = vmatprep.subr.bf16.mxu0 %v1639_v62  ;;  %1428 = vmatprep.mubr.msk.bf16.mxu0 %vm1640_vm2, %v1639_v62 }
 0x25b   :  { %v1818_v45 = vpop.eup %1471  ;;  %v753_v57 = vsel %vm450_vm1, %v1812_v38, 0.0  ;;  %v740_v61 = vrot.slane %v739_v33, 4  ;;  %v660_v52 = vmax.f32 %v658_v9, %v659_v42  ;;  %1485 = vpow2.f32 %v718_v35  ;;  %1425 = vmatpush3.bf16.msra.mxu0 %v1461_v54 }
 0x25c   :  { %v1827_v53 = vpop.eup %1473  ;;  %v760_v60 = vsel %vm450_vm1, %v1818_v45, 0.0  ;;  %v754_v0 = vrot.slane %v753_v57, 4  ;;  %v736_v49 = vadd.f32 %v735_v22, %v734_v55  ;;  %v728_v51 = vmul.f32 1.442695, %v698_v41  ;;  %v1462_v55 = vld [vmem:[#allocation8] sm:$0xff]   ;;  %1426 = vmatprep.subr.bf16.mxu0 %v1639_v62 }
 0x25d   :  { %v774_v63 = vsel %vm450_vm1, %v1827_v53, 0.0  ;;  %v761_v3 = vrot.slane %v760_v60, 4  ;;  %v1838_v4 = vpop.eup %1475  ;;  %v741_v6 = vadd.f32 %v740_v61, %v739_v33  ;;  %v665_v33 = vmax.f32 %v663_v25, %v664_v19 }
 0x25e   :  { %v1840_v14 = vpop.eup %1477  ;;  %v775_v16 = vrot.slane %v774_v63, 4  ;;  %v755_v21 = vadd.f32 %v754_v0, %v753_v57  ;;  %v767_v24 = vsel %vm450_vm1, %v1838_v4, 0.0  ;;  %v751_v61 = vrot.slane %v750_v5, 1 }
 0x25f   :  { %v762_v23 = vadd.f32 %v761_v3, %v760_v60  ;;  %v781_v28 = vsel %vm450_vm1, %v1840_v14, 0.0  ;;  %v742_v30 = vrot.slane %v741_v6, 2  ;;  %v768_v46 = vrot.slane %v767_v24, 4  ;;  %1427 = vmatpush3.bf16.msra.mxu0 %v1462_v55 }
 0x260   :  { %v756_v58 = vrot.slane %v755_v21, 2  ;;  %v681_v60 = vmax.f32 %v679_v11, %v680_v43  ;;  %v661_v40 = vrot.slane %v660_v52, 1  ;;  %v666_v47 = vrot.slane %v665_v33, 2 }
 0x261   :  { %v1842_v20 = vpop.eup %1479  ;;  %v763_v57 = vrot.slane %v762_v23, 2  ;;  %v743_v59 = vadd.f32 %v742_v30, %v741_v6  ;;  %v769_v7 = vadd.f32 %v768_v46, %v767_v24  ;;  %1487 = vpow2.f32 %v728_v51 }
 0x262   :  { %v802_v31 = vsel %vm450_vm1, %v1842_v20, 0.0  ;;  %v757_v34 = vadd.f32 %v756_v58, %v755_v21  ;;  %v737_v0 = vrot.slane %v736_v49, 1  ;;  %v782_v1 = vrot.slane %v781_v28, 4 }
 0x263   :  { %v803_v50 = vrot.slane %v802_v31, 4  ;;  %v662_v2 = vmax.f32 %v660_v52, %v661_v40  ;;  %v776_v3 = vadd.f32 %v775_v16, %v774_v63  ;;  %v744_v6 = vrot.slane %v743_v59, 1 }
 0x264   :  { %v682_v8 = vrot.slane %v681_v60, 1  ;;  %v752_v9 = vadd.f32 %v751_v61, %v750_v5  ;;  %v764_v11 = vadd.f32 %v763_v57, %v762_v23  ;;  %v667_v18 = vmax.f32 %v665_v33, %v666_v47  ;;  %v1853_v56 = vpop.eup %1481 }
 0x265   :  { %v804_v25 = vadd.f32 %v803_v50, %v802_v31  ;;  %v696_v15 = vsub.f32 %v1800_v26, %v662_v2  ;;  %v758_v19 = vrot.slane %v757_v34, 1  ;;  %v770_v21 = vrot.slane %v769_v7, 2 }
 0x266   :  { %v738_v44 = vadd.f32 %v737_v0, %v736_v49  ;;  %v783_v22 = vadd.f32 %v782_v1, %v781_v28  ;;  %v777_v30 = vrot.slane %v776_v3, 2  ;;  %v745_v31 = vadd.f32 %v744_v6, %v743_v59  ;;  %v1857_v42 = vpop.eup %1483 }
 0x267   :  { %v805_v24 = vrot.slane %v804_v25, 2  ;;  %v724_v27 = vmul.f32 1.442695, %v696_v15  ;;  %v788_v63 = vsel %vm450_vm1, %v1853_v56, 0.0  ;;  %v683_v16 = vmax.f32 %v681_v60, %v682_v8 }
 0x268   :  { %1489 = vrcp.f32 %v752_v9  ;;  %v765_v23 = vrot.slane %v764_v11, 1  ;;  %v789_v35 = vrot.slane %v788_v63, 4  ;;  %v668_v26 = vrot.slane %v667_v18, 1  ;;  %v1860_v49 = vpop.eup %1485 }
 0x269   :  { %v759_v5 = vadd.f32 %v758_v19, %v757_v34  ;;  %v771_v41 = vadd.f32 %v770_v21, %v769_v7  ;;  %1491 = vpow2.f32 %v724_v27  ;;  %v784_v28 = vrot.slane %v783_v22, 2 }
 0x26a   :  { %1493 = vrcp.f32 %v738_v44  ;;  %v806_v43 = vadd.f32 %v805_v24, %v804_v25  ;;  %v778_v58 = vadd.f32 %v777_v30, %v776_v3  ;;  %v790_v46 = vadd.f32 %v789_v35, %v788_v63 }
 0x26b   :  { %1495 = vrcp.f32 %v745_v31  ;;  %v699_v33 = vsub.f32 %v1808_v36, %v683_v16  ;;  %v766_v50 = vadd.f32 %v765_v23, %v764_v11  ;;  %v809_v51 = vsel %vm450_vm1, %v1857_v42, 0.0 }
 0x26c   :  { %v669_v52 = vmax.f32 %v667_v18, %v668_v26  ;;  %1497 = vrcp.f32 %v759_v5  ;;  %v772_v54 = vrot.slane %v771_v41, 1  ;;  %v785_v59 = vadd.f32 %v784_v28, %v783_v22 }
 0x26d   :  { %v807_v60 = vrot.slane %v806_v43, 1  ;;  %v791_v61 = vrot.slane %v790_v46, 2  ;;  %v810_v40 = vrot.slane %v809_v51, 4  ;;  %v779_v47 = vrot.slane %v778_v58, 1 }
 0x26e   :  { %v1864_v57 = vpop.eup %1487  ;;  %v795_v34 = vsel %vm450_vm1, %v1860_v49, 0.0  ;;  %v730_v36 = vmul.f32 1.442695, %v699_v33  ;;  %1499 = vrcp.f32 %v766_v50  ;;  %v697_v0 = vsub.f32 %v1825_v39, %v669_v52 }
 0x26f   :  { %v792_v7 = vadd.f32 %v791_v61, %v790_v46  ;;  %v811_v62 = vadd.f32 %v810_v40, %v809_v51  ;;  %v773_v1 = vadd.f32 %v772_v54, %v771_v41  ;;  %v796_v25 = vrot.slane %v795_v34, 4 }
 0x270   :  { %v830_v2 = vsel %vm450_vm1, %v1864_v57, 0.0  ;;  %v99_v55 = vsub.s32 1, %v1704_v10  ;;  %v786_v3 = vrot.slane %v785_v59, 1  ;;  %v808_v6 = vadd.f32 %v807_v60, %v806_v43 }
 0x271   :  { %v793_v8 = vrot.slane %v792_v7, 1  ;;  %v812_v9 = vrot.slane %v811_v62, 2  ;;  %v797_v11 = vadd.f32 %v796_v25, %v795_v34  ;;  %v831_v15 = vrot.slane %v830_v2, 4 }
 0x272   :  { %1501 = vpow2.f32 %v730_v36  ;;  %v780_v18 = vadd.f32 %v779_v47, %v778_v58  ;;  %v726_v21 = vmul.f32 1.442695, %v697_v0  ;;  %v100_v30 = vrot.slane %v1712_v13, %v99_v55 }
 0x273   :  { %v794_v19 = vadd.f32 %v793_v8, %v792_v7  ;;  %1503 = vrcp.f32 %v773_v1  ;;  %v813_v39 = vadd.f32 %v812_v9, %v811_v62  ;;  %v798_v22 = vrot.slane %v797_v11, 2 }
 0x274   :  { %v832_v24 = vadd.f32 %v831_v15, %v830_v2  ;;  %v787_v31 = vadd.f32 %v786_v3, %v785_v59  ;;  %v1881_v13 = vadd.f32 %v1716_v17, %v100_v30 }
 0x275   :  { %v1490_v44 = vpop.eup %1489  ;;  %1505 = vrcp.f32 %v794_v19  ;;  %v814_v16 = vrot.slane %v813_v39, 1  ;;  %v799_v23 = vadd.f32 %v798_v22, %v797_v11 }
 0x276   :  { %v1872_v27 = vpop.eup %1491  ;;  %1507 = vrcp.f32 %v808_v6  ;;  %v833_v35 = vrot.slane %v832_v24, 2  ;;  %v862_v5 = vmul.f32 %v1490_v44, %v1802_v48 }
 0x277   :  { %v1494_v63 = vpop.eup %1493  ;;  %v816_v41 = vsel %vm450_vm1, %v1872_v27, 0.0  ;;  %1509 = vpow2.f32 %v726_v21  ;;  %v815_v28 = vadd.f32 %v814_v16, %v813_v39  ;;  %v800_v43 = vrot.slane %v799_v23, 1 }
 0x278   :  { %v1496_v26 = vpop.eup %1495  ;;  %1511 = vrcp.f32 %v780_v18  ;;  %v834_v58 = vadd.f32 %v833_v35, %v832_v24  ;;  %v860_v33 = vmul.f32 %v1494_v63, %v1804_v29  ;;  %v817_v50 = vrot.slane %v816_v41, 4 }
 0x279   :  { %v1498_v46 = vpop.eup %1497  ;;  %1513 = vrcp.f32 %v787_v31  ;;  %v861_v51 = vmul.f32 %v1496_v26, %v1810_v37  ;;  %v801_v48 = vadd.f32 %v800_v43, %v799_v23  ;;  %v878_v54 = vmul.f32 %v862_v5, %v1881_v13 }
 0x27a   :  { %1515 = vrcp.f32 %v815_v28  ;;  %v835_v52 = vrot.slane %v834_v58, 1  ;;  %v818_v59 = vadd.f32 %v817_v50, %v816_v41  ;;  %v863_v61 = vmul.f32 %v1498_v46, %v1812_v38 }
 0x27b   :  { %v1500_v60 = vpop.eup %1499  ;;  %1517 = vrcp.f32 %v801_v48  ;;  %v876_v17 = vmul.f32 %v860_v33, %v1881_v13  ;;  %v877_v29 = vmul.f32 %v861_v51, %v1881_v13  ;;  %v906_v37 = vsel %vm450_vm1, %v878_v54, 0.0 }
 0x27c   :  { %v836_v40 = vadd.f32 %v835_v52, %v834_v58  ;;  %v819_v47 = vrot.slane %v818_v59, 2  ;;  %v864_v36 = vmul.f32 %v1500_v60, %v1818_v45  ;;  %v879_v62 = vmul.f32 %v863_v61, %v1881_v13 }
 0x27d   :  { %v892_v1 = vsel %vm450_vm1, %v876_v17, 0.0  ;;  %v907_v6 = vrot.slane %v906_v37, 4  ;;  %v899_v8 = vsel %vm450_vm1, %v877_v29, 0.0  ;;  %v1903_v21 = vadd.f32 %v1745_v32, %v100_v30 }
 0x27e   :  { %1519 = vrcp.f32 %v836_v40  ;;  %v820_v7 = vadd.f32 %v819_v47, %v818_v59  ;;  %v880_v11 = vmul.f32 %v864_v36, %v1881_v13  ;;  %v893_v44 = vrot.slane %v892_v1, 4 }
 0x27f   :  { %v1889_v34 = vpop.eup %1501  ;;  %v913_v39 = vsel %vm450_vm1, %v879_v62, 0.0  ;;  %v900_v31 = vrot.slane %v899_v8, 4  ;;  %v908_v5 = vadd.f32 %v907_v6, %v906_v37 }
 0x280   :  { %v837_v38 = vsel %vm450_vm1, %v1889_v34, 0.0  ;;  %v1504_v0 = vpop.eup %1503  ;;  %v821_v25 = vrot.slane %v820_v7, 1  ;;  %v920_v32 = vsel %vm450_vm1, %v880_v11, 0.0  ;;  %v894_v28 = vadd.f32 %v893_v44, %v892_v1 }
 0x281   :  { %v838_v2 = vrot.slane %v837_v38, 4  ;;  %v865_v22 = vmul.f32 %v1504_v0, %v1838_v4  ;;  %v914_v4 = vrot.slane %v913_v39, 4  ;;  %v901_v50 = vadd.f32 %v900_v31, %v899_v8 }
 0x282   :  { %v1506_v3 = vpop.eup %1505  ;;  %v822_v15 = vadd.f32 %v821_v25, %v820_v7  ;;  %v909_v61 = vrot.slane %v908_v5, 2  ;;  %v921_v40 = vrot.slane %v920_v32, 4  ;;  %v895_v29 = vrot.slane %v894_v28, 2 }
 0x283   :  { %v1508_v9 = vpop.eup %1507  ;;  %v868_v45 = vmul.f32 %v1506_v3, %v1853_v56  ;;  %v839_v18 = vadd.f32 %v838_v2, %v837_v38  ;;  %v881_v43 = vmul.f32 %v865_v22, %v1881_v13  ;;  %v915_v37 = vadd.f32 %v914_v4, %v913_v39 }
 0x284   :  { %v1900_v19 = vpop.eup %1509  ;;  %1521 = vrcp.f32 %v822_v15  ;;  %v870_v23 = vmul.f32 %v1508_v9, %v1842_v20  ;;  %v902_v36 = vrot.slane %v901_v50, 2  ;;  %v922_v1 = vadd.f32 %v921_v40, %v920_v32 }
 0x285   :  { %v1512_v24 = vpop.eup %1511  ;;  %v840_v63 = vrot.slane %v839_v18, 2  ;;  %v823_v16 = vsel %vm450_vm1, %v1900_v19, 0.0  ;;  %v884_v30 = vmul.f32 %v868_v45, %v1903_v21  ;;  %v910_v6 = vadd.f32 %v909_v61, %v908_v5 }
 0x286   :  { %v1514_v56 = vpop.eup %1513  ;;  %v824_v35 = vrot.slane %v823_v16, 4  ;;  %v866_v33 = vmul.f32 %v1512_v24, %v1827_v53  ;;  %v886_v52 = vmul.f32 %v870_v23, %v1903_v21  ;;  %v927_v53 = vsel %vm450_vm1, %v881_v43, 0.0 }
 0x287   :  { %v1516_v26 = vpop.eup %1515  ;;  %v841_v41 = vadd.f32 %v840_v63, %v839_v18  ;;  %v867_v48 = vmul.f32 %v1514_v56, %v1840_v14  ;;  %v948_v17 = vsel %vm450_vm1, %v884_v30, 0.0  ;;  %v928_v25 = vrot.slane %v927_v53, 4 }
 0x288   :  { %v825_v58 = vadd.f32 %v824_v35, %v823_v16  ;;  %v1518_v46 = vpop.eup %1517  ;;  %v871_v51 = vmul.f32 %v1516_v26, %v1857_v42  ;;  %v949_v62 = vrot.slane %v948_v17, 4  ;;  %v882_v8 = vmul.f32 %v866_v33, %v1881_v13 }
 0x289   :  { %v842_v20 = vrot.slane %v841_v41, 1  ;;  %v869_v54 = vmul.f32 %v1518_v46, %v1860_v49  ;;  %v962_v49 = vsel %vm450_vm1, %v886_v52, 0.0  ;;  %v896_v9 = vadd.f32 %v895_v29, %v894_v28 }
 0x28a   :  { %v826_v59 = vrot.slane %v825_v58, 2  ;;  %v887_v14 = vmul.f32 %v871_v51, %v1903_v21  ;;  %v883_v11 = vmul.f32 %v867_v48, %v1881_v13  ;;  %v963_v45 = vrot.slane %v962_v49, 4 }
 0x28b   :  { %v1520_v60 = vpop.eup %1519  ;;  %v843_v47 = vadd.f32 %v842_v20, %v841_v41  ;;  %v885_v42 = vmul.f32 %v869_v54, %v1903_v21  ;;  %v916_v22 = vrot.slane %v915_v37, 2  ;;  %v903_v24 = vadd.f32 %v902_v36, %v901_v50 }
 0x28c   :  { %v827_v7 = vadd.f32 %v826_v59, %v825_v58  ;;  %v874_v0 = vmul.f32 %v1520_v60, %v1864_v57  ;;  %v969_v15 = vsel %vm450_vm1, %v887_v14, 0.0  ;;  %v950_v31 = vadd.f32 %v949_v62, %v948_v17 }
 0x28d   :  { %1523 = vrcp.f32 %v843_v47  ;;  %v955_v38 = vsel %vm450_vm1, %v885_v42, 0.0  ;;  %v923_v16 = vrot.slane %v922_v1, 2  ;;  %v929_v56 = vadd.f32 %v928_v25, %v927_v53 }
 0x28e   :  { %v956_v2 = vrot.slane %v955_v38, 4  ;;  %v828_v3 = vrot.slane %v827_v7, 1  ;;  %v890_v57 = vmul.f32 %v874_v0, %v1903_v21  ;;  %v970_v23 = vrot.slane %v969_v15, 4 }
 0x28f   :  { %v934_v13 = vsel %vm450_vm1, %v882_v8, 0.0  ;;  %v941_v26 = vsel %vm450_vm1, %v883_v11, 0.0  ;;  %v897_v5 = vrot.slane %v896_v9, 1  ;;  %v964_v32 = vadd.f32 %v963_v45, %v962_v49 }
 0x290   :  { %v957_v18 = vadd.f32 %v956_v2, %v955_v38  ;;  %v829_v44 = vadd.f32 %v828_v3, %v827_v7  ;;  %v911_v41 = vrot.slane %v910_v6, 1  ;;  %v904_v28 = vrot.slane %v903_v24, 1 }
 0x291   :  { %v1522_v39 = vpop.eup %1521  ;;  %v951_v4 = vrot.slane %v950_v31, 2  ;;  %v917_v43 = vadd.f32 %v916_v22, %v915_v37  ;;  %v990_v58 = vsel %vm450_vm1, %v890_v57, 0.0  ;;  %v924_v46 = vadd.f32 %v923_v16, %v922_v1 }
 0x292   :  { %v872_v63 = vmul.f32 %v1522_v39, %v1872_v27  ;;  %1525 = vrcp.f32 %v829_v44  ;;  %v958_v35 = vrot.slane %v957_v18, 2  ;;  %v935_v33 = vrot.slane %v934_v13, 4 }
 0x293   :  { %v942_v50 = vrot.slane %v941_v26, 4  ;;  %v971_v51 = vadd.f32 %v970_v23, %v969_v15  ;;  %v930_v52 = vrot.slane %v929_v56, 2  ;;  %v965_v54 = vrot.slane %v964_v32, 2 }
 0x294   :  { %v888_v30 = vmul.f32 %v872_v63, %v1903_v21  ;;  %v959_v20 = vadd.f32 %v958_v35, %v957_v18  ;;  %v1935_v59 = vadd.f32 %v897_v5, %v896_v9  ;;  %v991_v60 = vrot.slane %v990_v58, 4 }
 0x295   :  { %v952_v40 = vadd.f32 %v951_v4, %v950_v31  ;;  %v1937_v47 = vadd.f32 %v904_v28, %v903_v24  ;;  %v918_v29 = vrot.slane %v917_v43, 1  ;;  %v925_v53 = vrot.slane %v924_v46, 1 }
 0x296   :  { %v976_v27 = vsel %vm450_vm1, %v888_v30, 0.0  ;;  %v936_v42 = vadd.f32 %v935_v33, %v934_v13  ;;  %v943_v36 = vadd.f32 %v942_v50, %v941_v26  ;;  %v972_v14 = vrot.slane %v971_v51, 2 }
 0x297   :  { %v977_v48 = vrot.slane %v976_v27, 4  ;;  %v960_v7 = vrot.slane %v959_v20, 1  ;;  %v1940_v49 = vadd.f32 %v911_v41, %v910_v6  ;;  %v931_v62 = vadd.f32 %v930_v52, %v929_v56 }
 0x298   :  { %v966_v38 = vadd.f32 %v965_v54, %v964_v32  ;;  %v992_v25 = vadd.f32 %v991_v60, %v990_v58  ;;  %v953_v2 = vrot.slane %v952_v40, 1  ;;  %v1943_v3 = vadd.f32 %v918_v29, %v917_v43 }
 0x299   :  { %v978_v17 = vadd.f32 %v977_v48, %v976_v27  ;;  %v1005_v8 = vpack.c.bf16 %v1937_v47, %v1937_v47  ;;  %v1949_v9 = vadd.f32 %v925_v53, %v924_v46  ;;  %v937_v6 = vrot.slane %v936_v42, 2 }
 0x29a   :  { %v1524_v61 = vpop.eup %1523  ;;  %v944_v11 = vrot.slane %v943_v36, 2  ;;  %v932_v18 = vrot.slane %v931_v62, 1  ;;  %v1952_v44 = vadd.f32 %v960_v7, %v959_v20  ;;  %v973_v39 = vadd.f32 %v972_v14, %v971_v51 }
 0x29b   :  { %v875_v37 = vmul.f32 %v1524_v61, %v1889_v34  ;;  %v979_v1 = vrot.slane %v978_v17, 2  ;;  %v1004_v34 = vpack.c.bf16 %v1935_v59, %v1935_v59  ;;  %v967_v31 = vrot.slane %v966_v38, 1 }
 0x29c   :  { %v993_v63 = vrot.slane %v992_v25, 2  ;;  %v1955_v16 = vadd.f32 %v953_v2, %v952_v40  ;;  %v1006_v23 = vpack.c.bf16 %v1940_v49, %v1940_v49  ;;  %v1048_v35 = vunpack.c.l.b16 %v1005_v8 }
 0x29d   :  { %v891_v0 = vmul.f32 %v875_v37, %v1903_v21  ;;  %v980_v57 = vadd.f32 %v979_v1, %v978_v17  ;;  %v938_v26 = vadd.f32 %v937_v6, %v936_v42  ;;  %v945_v5 = vadd.f32 %v944_v11, %v943_v36 }
 0x29e   :  { %v1007_v32 = vpack.c.bf16 %v1943_v3, %v1943_v3  ;;  %v974_v30 = vrot.slane %v973_v39, 1  ;;  %v1013_v41 = vpack.c.bf16 %v1952_v44, %v1952_v44  ;;  %v1047_v28 = vunpack.c.l.b16 %v1004_v34 }
 0x29f   :  { %v997_v45 = vsel %vm450_vm1, %v891_v0, 0.0  ;;  %v1526_v15 = vpop.eup %1525  ;;  %v1965_v43 = vadd.f32 %v967_v31, %v966_v38  ;;  %v981_v58 = vrot.slane %v980_v57, 1  ;;  %v994_v27 = vadd.f32 %v993_v63, %v992_v25 }
 0x2a0   :  { %v998_v22 = vrot.slane %v997_v45, 4  ;;  %v873_v24 = vmul.f32 %v1526_v15, %v1900_v19  ;;  %v1064_v50 = vsel %vm1063_vm3, %v1048_v35, %v1047_v28  ;;  %v1970_v51 = vadd.f32 %v932_v18, %v931_v62 }
 0x2a1   :  { %v939_v20 = vrot.slane %v938_v26, 1  ;;  %v946_v48 = vrot.slane %v945_v5, 1  ;;  %v1049_v52 = vunpack.c.l.b16 %v1006_v23  ;;  %v1972_v54 = vadd.f32 %v974_v30, %v973_v39 }
 0x2a2   :  { %v999_v56 = vadd.f32 %v998_v22, %v997_v45  ;;  %v889_v13 = vmul.f32 %v873_v24, %v1903_v21  ;;  %v1012_v21 = vpack.c.bf16 %v1955_v16, %v1955_v16  ;;  %v1008_v61 = vpack.c.bf16 %v1949_v9, %v1949_v9 }
 0x2a3   :  { %v1056_v40 = vunpack.c.l.b16 %v1013_v41  ;;  %v1976_v17 = vadd.f32 %v981_v58, %v980_v57  ;;  %v995_v29 = vrot.slane %v994_v27, 1  ;;  %v1014_v37 = vpack.c.bf16 %v1965_v43, %v1965_v43 }
 0x2a4   :  { %v1000_v19 = vrot.slane %v999_v56, 2  ;;  %v983_v4 = vsel %vm450_vm1, %v889_v13, 0.0  ;;  %v1066_v53 = vsel %vm1065_vm4, %v1049_v52, %v1064_v50  ;;  %v1050_v14 = vunpack.c.l.b16 %v1007_v32 }
 0x2a5   :  { %v984_v46 = vrot.slane %v983_v4, 4  ;;  %v1055_v7 = vunpack.c.l.b16 %v1012_v21  ;;  %v1981_v62 = vadd.f32 %v939_v20, %v938_v26  ;;  %v1983_v38 = vadd.f32 %v946_v48, %v945_v5  ;;  %v2022_v48 = vld [vmem:[%s2129_s6] sm:$0x3] }
 0x2a6   :  { %v1001_v33 = vadd.f32 %v1000_v19, %v999_v56  ;;  %v1009_v0 = vpack.c.bf16 %v1970_v51, %v1970_v51  ;;  %v1015_v25 = vpack.c.bf16 %v1972_v54, %v1972_v54  ;;  %v1068_v2 = vsel %vm1067_vm5, %v1050_v14, %v1066_v53 }
 0x2a7   :  { %v985_v60 = vadd.f32 %v984_v46, %v983_v4  ;;  %v1077_v34 = vsel %vm1063_vm3, %v1056_v40, %v1055_v7  ;;  %v1991_v8 = vadd.f32 %v995_v29, %v994_v27  ;;  %v1016_v6 = vpack.c.bf16 %v1976_v17, %v1976_v17  ;;  %v1371_v40 = vld [vmem:[%s2128_s5] ss:$0 sm:$0xff] }
 0x2a8   :  { %v1002_v36 = vrot.slane %v1001_v33, 1  ;;  %v1051_v11 = vunpack.c.l.b16 %v1008_v61  ;;  %v1057_v45 = vunpack.c.l.b16 %v1014_v37  ;;  %v1010_v39 = vpack.c.bf16 %v1981_v62, %v1981_v62 }
 0x2a9   :  { %v986_v42 = vrot.slane %v985_v60, 2  ;;  %v1052_v57 = vunpack.c.l.b16 %v1009_v0  ;;  %v1058_v63 = vunpack.c.l.b16 %v1015_v25  ;;  %v1011_v56 = vpack.c.bf16 %v1983_v38, %v1983_v38 }
 0x2aa   :  { %v1995_v18 = vadd.f32 %v1002_v36, %v1001_v33  ;;  %v1070_v22 = vsel %vm1069_vm6, %v1051_v11, %v1068_v2  ;;  %v1078_v24 = vsel %vm1065_vm4, %v1057_v45, %v1077_v34  ;;  %v1018_v23 = vpack.c.bf16 %v1991_v8, %v1991_v8 }
 0x2ab   :  { %v987_v1 = vadd.f32 %v986_v42, %v985_v60  ;;  %v1059_v35 = vunpack.c.l.b16 %v1016_v6  ;;  %v1072_v5 = vsel %vm1071_vm7, %v1052_v57, %v1070_v22  ;;  %v1079_v32 = vsel %vm1067_vm5, %v1058_v63, %v1078_v24 }
 0x2ac   :  { %v1019_v26 = vpack.c.bf16 %v1995_v18, %v1995_v18  ;;  %v1053_v30 = vunpack.c.l.b16 %v1010_v39  ;;  %v1061_v41 = vunpack.c.l.b16 %v1018_v23  ;;  %v1054_v58 = vunpack.c.l.b16 %v1011_v56 }
 0x2ad   :  { %v988_v15 = vrot.slane %v987_v1, 1  ;;  %v1080_v4 = vsel %vm1069_vm6, %v1059_v35, %v1079_v32  ;;  %v1242_v52 = vrot.slane %v2022_v48, %v99_v55 }
 0x2ae   :  { %v1074_v28 = vsel %vm1073_vm8, %v1053_v30, %v1072_v5  ;;  %v1062_v27 = vunpack.c.l.b16 %v1019_v26 }
 0x2af   :  { %v2001_v31 = vadd.f32 %v988_v15, %v987_v1  ;;  %v1076_v21 = vsel %vm1075_vm9, %v1054_v58, %v1074_v28 }
 0x2b1   :  { %v1017_v13 = vpack.c.bf16 %v2001_v31, %v2001_v31 }
 0x2b3   :  { %v1060_v19 = vunpack.c.l.b16 %v1017_v13 }
 0x2b5   :  { %v1081_v46 = vsel %vm1071_vm7, %v1060_v19, %v1080_v4 }
 0x2b6   :  { %v1082_v33 = vsel %vm1073_vm8, %v1061_v41, %v1081_v46 }
 0x2b7   :  { %v1083_v50 = vsel %vm1075_vm9, %v1062_v27, %v1082_v33 }
 0x2b8   :  { %v1084_v20 = vpack.c.b16 %v1083_v50, %v1076_v21 }
 0x2ba   :  { %1085 = vrot.lane.b32.xlu1 %v1084_v20, %s1641_s28 }
 0x2be   :  { %1244 = vrot.lane.b32.xlu1 %v1242_v52, %s1642_s29 }
 0x32c   :  { %v1086_v60 = vpop.permute.xlu1 %1085 }
 0x32d   :  { %1429 = vmatmul.mubr.msk.bf16.vlgmr.msra.gmra.mxu0 %vm1099_vm10, %v1086_v60 }
 0x330   :  { %v1245_v61 = vpop.permute.xlu1 %1244 }
 0x331   :  { %v1256_v29 = vmul.f32 %v1245_v61, %v1952_v44  ;;  %v1248_v37 = vmul.f32 %v1245_v61, %v1937_v47  ;;  %v1257_v10 = vmul.f32 %v1245_v61, %v1965_v43  ;;  %v1249_v14 = vmul.f32 %v1245_v61, %v1940_v49 }
 0x332   :  { %v1255_v25 = vmul.f32 %v1245_v61, %v1955_v16  ;;  %v1247_v6 = vmul.f32 %v1245_v61, %v1935_v59  ;;  %v1258_v45 = vmul.f32 %v1245_v61, %v1972_v54  ;;  %v1250_v24 = vmul.f32 %v1245_v61, %v1943_v3 }
 0x333   :  { %v1293_v36 = vrot.slane %v1256_v29, 7  ;;  %v1279_v0 = vrot.slane %v1248_v37, 7  ;;  %v1295_v34 = vrot.slane %v1257_v10, 6  ;;  %v1281_v39 = vrot.slane %v1249_v14, 6 }
 0x334   :  { %v1259_v63 = vmul.f32 %v1245_v61, %v1976_v17  ;;  %v1297_v23 = vrot.slane %v1258_v45, 5  ;;  %v1251_v35 = vmul.f32 %v1245_v61, %v1949_v9  ;;  %v1283_v26 = vrot.slane %v1250_v24, 5 }
 0x335   :  { %v1294_v15 = vsel %vm1063_vm3, %v1293_v36, %v1255_v25  ;;  %v1280_v57 = vsel %vm1063_vm3, %v1279_v0, %v1247_v6  ;;  %v1260_v5 = vmul.f32 %v1245_v61, %v2001_v31  ;;  %v1252_v19 = vmul.f32 %v1245_v61, %v1970_v51 }
 0x336   :  { %v1296_v56 = vsel %vm1065_vm4, %v1295_v34, %v1294_v15  ;;  %v1282_v13 = vsel %vm1065_vm4, %v1281_v39, %v1280_v57  ;;  %v1299_v30 = vrot.slane %v1259_v63, 4  ;;  %v1285_v28 = vrot.slane %v1251_v35, 4 }
 0x337   :  { %v1298_v32 = vsel %vm1067_vm5, %v1297_v23, %v1296_v56  ;;  %v1284_v41 = vsel %vm1067_vm5, %v1283_v26, %v1282_v13  ;;  %v1261_v4 = vmul.f32 %v1245_v61, %v1991_v8  ;;  %v1301_v27 = vrot.slane %v1260_v5, 3 }
 0x338   :  { %v1300_v58 = vsel %vm1069_vm6, %v1299_v30, %v1298_v32  ;;  %v1253_v46 = vmul.f32 %v1245_v61, %v1981_v62  ;;  %v1286_v33 = vsel %vm1069_vm6, %v1285_v28, %v1284_v41  ;;  %v1287_v21 = vrot.slane %v1252_v19, 3 }
 0x339   :  { %v1262_v50 = vmul.f32 %v1245_v61, %v1995_v18  ;;  %v1302_v20 = vsel %vm1071_vm7, %v1301_v27, %v1300_v58  ;;  %v1303_v52 = vrot.slane %v1261_v4, 2  ;;  %v1254_v60 = vmul.f32 %v1245_v61, %v1983_v38 }
 0x33a   :  { %v1289_v29 = vrot.slane %v1253_v46, 2  ;;  %v1170_v14 = vrot.slane %v2022_v48, %v1707_v12 }
 0x33b   :  { %v1304_v37 = vsel %vm1073_vm8, %v1303_v52, %v1302_v20 }
 0x33c   :  { %v1172_v61 = vmul.f32 %v1170_v14, %v1937_v47  ;;  %v1171_v25 = vmul.f32 %v1170_v14, %v1935_v59  ;;  %v1180_v34 = vmul.f32 %v1170_v14, %v1952_v44  ;;  %v1174_v6 = vmul.f32 %v1170_v14, %v1943_v3 }
 0x33d   :  { %v1175_v45 = vmul.f32 %v1170_v14, %v1949_v9  ;;  %v1181_v39 = vmul.f32 %v1170_v14, %v1965_v43  ;;  %v1182_v44 = vmul.f32 %v1170_v14, %v1972_v54  ;;  %v1183_v57 = vmul.f32 %v1170_v14, %v1976_v17 }
 0x33e   :  { %v1203_v0 = vrot.slane %v1172_v61, 7  ;;  %v1217_v48 = vrot.slane %v1180_v34, 7  ;;  %v1207_v47 = vrot.slane %v1174_v6, 5  ;;  %v1184_v9 = vmul.f32 %v1170_v14, %v2001_v31 }
 0x33f   :  { %v1209_v24 = vrot.slane %v1175_v45, 4  ;;  %v1219_v63 = vrot.slane %v1181_v39, 6  ;;  %v1177_v56 = vmul.f32 %v1170_v14, %v1981_v62  ;;  %v1223_v35 = vrot.slane %v1183_v57, 4 }
 0x340   :  { %v1178_v13 = vmul.f32 %v1170_v14, %v1983_v38  ;;  %v1225_v5 = vrot.slane %v1184_v9, 3  ;;  %v1185_v32 = vmul.f32 %v1170_v14, %v1991_v8  ;;  %v1186_v19 = vmul.f32 %v1170_v14, %v1995_v18 }
 0x341   :  { %v1213_v17 = vrot.slane %v1177_v56, 2 }
 0x342   :  { %v1215_v30 = vrot.slane %v1178_v13, 1  ;;  %v1227_v28 = vrot.slane %v1185_v32, 2  ;;  %v1229_v58 = vrot.slane %v1186_v19, 1 }
 0x3ed   :  { %v1137_v53 = vpop.f32.mrf.mxu0 }
 0x3ee   :  { %v2034_v42 = vadd.f32 %v1371_v40, %v1137_v53  ;;  %v1305_v53 = vrot.slane %v1262_v50, 1 }
 0x3ef   :  { %v1430_v55 = vpop.f32.mrf.mxu0 }
 0x3f0   :  { %v1144_v7 = vsel %vm450_vm1, %v2034_v42, -inf  ;;  %v1291_v55 = vrot.slane %v1254_v60, 1  ;;  %v1306_v36 = vsel %vm1075_vm9, %v1305_v53, %v1304_v37 }
 0x3f1   :  { %1145 = vmax.xlane.f32.xlu0 %v1144_v7  ;;  %v1140_v1 = vpop.f32.mrf.mxu0 }
 0x3f2   :  { %v2041_v2 = vadd.f32 %v1371_v40, %v1140_v1  ;;  %v1288_v40 = vsel %vm1071_vm7, %v1287_v21, %v1286_v33  ;;  %v1173_v1 = vmul.f32 %v1170_v14, %v1940_v49  ;;  %v1176_v49 = vmul.f32 %v1170_v14, %v1970_v51 }
 0x3f3   :  { %v1431_v11 = vpop.f32.mrf.mxu0  ;;  %v1290_v10 = vsel %vm1073_vm8, %v1289_v29, %v1288_v40  ;;  %v1221_v51 = vrot.slane %v1182_v44, 5 }
 0x3f4   :  { %v1147_v22 = vsel %vm450_vm1, %v2041_v2, -inf  ;;  %v1292_v7 = vsel %vm1075_vm9, %v1291_v55, %v1290_v10  ;;  %v1204_v11 = vsel %vm1063_vm3, %v1203_v0, %v1171_v25  ;;  %v1205_v12 = vrot.slane %v1173_v1, 6 }
 0x3f5   :  { %1148 = vmax.xlane.f32.xlu1 %v1147_v22  ;;  %v1179_v22 = vmul.f32 %v1170_v14, %v1955_v16  ;;  %v1211_v23 = vrot.slane %v1176_v49, 3 }
 0x3f6   :  { %v1206_v15 = vsel %vm1065_vm4, %v1205_v12, %v1204_v11 }
 0x3f7   :  { %v1208_v59 = vsel %vm1067_vm5, %v1207_v47, %v1206_v15  ;;  %v1218_v3 = vsel %vm1063_vm3, %v1217_v48, %v1179_v22 }
 0x3f8   :  { %v1210_v43 = vsel %vm1069_vm6, %v1209_v24, %v1208_v59  ;;  %v1220_v16 = vsel %vm1065_vm4, %v1219_v63, %v1218_v3 }
 0x3f9   :  { %v1212_v54 = vsel %vm1071_vm7, %v1211_v23, %v1210_v43  ;;  %v1222_v26 = vsel %vm1067_vm5, %v1221_v51, %v1220_v16 }
 0x3fa   :  { %v1214_v31 = vsel %vm1073_vm8, %v1213_v17, %v1212_v54  ;;  %v1224_v62 = vsel %vm1069_vm6, %v1223_v35, %v1222_v26 }
 0x3fb   :  { %v1226_v41 = vsel %vm1071_vm7, %v1225_v5, %v1224_v62  ;;  %v1216_v38 = vsel %vm1075_vm9, %v1215_v30, %v1214_v31 }
 0x3fc   :  { %v1228_v4 = vsel %vm1073_vm8, %v1227_v28, %v1226_v41  ;;  %v1233_v27 = vsel %vm1099_vm10, %v1216_v38, 0.0 }
 0x3fd   :  { %v1230_v8 = vsel %vm1075_vm9, %v1229_v58, %v1228_v4 }
 0x3fe   :  { %v1236_v46 = vsel %vm1099_vm10, %v1230_v8, 0.0 }
 0x406   :  { %1309 = vrot.lane.b32.xlu1 %v1306_v36, %s1641_s28 }
 0x407   :  { %1307 = vrot.lane.b32.xlu0 %v1292_v7, %s1641_s28 }
 0x426   :  { %1234 = vadd.xlane.f32.xlu0 %v1233_v27 }
 0x42a   :  { %1237 = vadd.xlane.f32.xlu1 %v1236_v46 }
 0x47a   :  { %v1146_v33 = vpop.xlane.xlu0 %1145 }
 0x47b   :  { %v1150_v21 = vsub.f32 %v2034_v42, %v1146_v33 }
 0x47d   :  { %v1152_v18 = vmul.f32 1.442695, %v1150_v21 }
 0x47e   :  { %v1308_v50 = vpop.permute.xlu0 %1307  ;;  %v1149_v20 = vpop.xlane.xlu1 %1148 }
 0x47f   :  { %1527 = vpow2.f32 %v1152_v18  ;;  %v1151_v52 = vsub.f32 %v2041_v2, %v1149_v20  ;;  %v1313_v60 = vsel %vm1099_vm10, %v1308_v50, 0.0  ;;  %v1322_v2 = vstv %s2130_s7 }
 0x480   :  { %1314 = vadd.xlane.f32.xlu0 %v1313_v60 }
 0x481   :  { %v1154_v40 = vmul.f32 1.442695, %v1151_v52 }
 0x482   :  { %v1310_v29 = vpop.permute.xlu1 %1309 }
 0x483   :  { %1529 = vpow2.f32 %v1154_v40  ;;  %v1316_v37 = vsel %vm1099_vm10, %v1310_v29, 0.0 }
 0x484   :  { %1317 = vadd.xlane.f32.xlu0 %v1316_v37 }
 0x48c   :  { %v1528_v53 = vpop.eup %1527 }
 0x48d   :  { %v1156_v10 = vsel %vm450_vm1, %v1528_v53, 0.0 }
 0x48e   :  { %1157 = vadd.xlane.f32.xlu1 %v1156_v10 }
 0x490   :  { %v1530_v42 = vpop.eup %1529 }
 0x491   :  { %v1159_v55 = vsel %vm450_vm1, %v1530_v42, 0.0 }
 0x492   :  { %1160 = vadd.xlane.f32.xlu0 %v1159_v55 }
 0x4af   :  { %v1235_v36 = vpop.xlane.xlu0 %1234 }
 0x4b3   :  { %v1238_v0 = vpop.xlane.xlu1 %1237 }
 0x509   :  { %v1315_v14 = vpop.xlane.xlu0 %1314 }
 0x50a   :  { %v1319_v7 = vadd.f32 %v1315_v14, %v1235_v36 }
 0x50c   :  { %v1323_v61 = vadd.f32 %v1322_v2, %v1319_v7 }
 0x50d   :  { %v1318_v1 = vpop.xlane.xlu0 %1317 }
 0x50e   :  { %v1375_v25 = vmul.f32 -1.442695, %v1323_v61  ;;  %v1320_v34 = vadd.f32 %v1318_v1, %v1238_v0 }
 0x510   :  { %1531 = vpow2.f32 %v1375_v25  ;;  %v1324_v6 = vadd.f32 %v1322_v2, %v1320_v34 }
 0x512   :  { %v1376_v11 = vmul.f32 -1.442695, %v1324_v6 }
 0x514   :  { %1533 = vpow2.f32 %v1376_v11 }
 0x517   :  { %v1158_v12 = vpop.xlane.xlu1 %1157 }
 0x518   :  { %1535 = vrcp.f32 %v1158_v12 }
 0x51b   :  { %v1161_v48 = vpop.xlane.xlu0 %1160 }
 0x51c   :  { %1537 = vrcp.f32 %v1161_v48 }
 0x51d   :  { %v1532_v45 = vpop.eup %1531 }
 0x51e   :  { %v1331_v15 = vadd.f32 1.0, %v1532_v45 }
 0x520   :  { %1539 = vrcp.f32 %v1331_v15 }
 0x521   :  { %v1534_v39 = vpop.eup %1533 }
 0x522   :  { %v1332_v47 = vadd.f32 1.0, %v1534_v39 }
 0x524   :  { %1541 = vrcp.f32 %v1332_v47 }
 0x525   :  { %v1536_v22 = vpop.eup %1535 }
 0x526   :  { %v1163_v59 = vmul.f32 %v1536_v22, %v1528_v53 }
 0x529   :  { %v1538_v49 = vpop.eup %1537 }
 0x52a   :  { %v1165_v24 = vmul.f32 %v1538_v49, %v1530_v42 }
 0x52d   :  { %v1540_v44 = vpop.eup %1539 }
 0x52e   :  { %v1337_v3 = vsel %vm450_vm1, %v1163_v59, %v1540_v44 }
 0x52f   :  { %1339 = vst [vmem:[%s2131_s8] sm:$0xff] %v1337_v3 }
 0x531   :  { %v1542_v57 = vpop.eup %1541 }
 0x532   :  { %v1338_v63 = vsel %vm450_vm1, %v1165_v24, %v1542_v57 }
 0x533   :  { %1340 = vst [vmem:[%s2131_s8 + $0x8] sm:$0xff] %v1338_v63 }
 0x534   :  { %1345 = vsyncpa [#allocation4], 1 }
 0x535   :  { %1346 = vsyncpa [#allocation6], 1 }
 0x536   :  { %1347 = vsyncpa [#allocation9], 1 }

</bundles_post_ra>
